<compile_context>
chip_gen: v7x
topology: tpu7x:2x2x1
jax: 0.10.0
libtpu: 0.0.40
codegen_flags: <defaults>
</compile_context>

<pallas_src>
import numpy as np
import jax
import jax.numpy as jnp
from jax import lax
from jax.experimental import pallas as pl
from jax.experimental.pallas import tpu as pltpu

K_DB = 50.0       # DBHead k
EPS_BN = 1e-5


# ----------------------------- Pallas kernel ------------------------------ #
def dbhead_kernel(xs_ref, w1_ref, aff1_ref, wt1_ref, aff2_ref, w2t_ref, b2_ref,
                  prob_ref, bin_ref):
    HP = lax.Precision.HIGHEST

    # 3x3 conv for BOTH branches: one wide-K bf16 matmul, f32 accumulation.
    #   xs: (THW, 9*Cin) bf16, w1: (9*Cin, 2*C1) bf16 -> y: (THW, 2*C1) f32
    y = jnp.dot(xs_ref[0], w1_ref[...], preferred_element_type=jnp.float32)
    # eval-mode BN1 (per-channel scale/shift) + ReLU
    y = jnp.maximum(y * aff1_ref[0] + aff1_ref[1], 0.0)

    # Deconv1 (all 4 (kh1,kw1) taps, both branches) as one block-diagonal
    # matmul: (THW, 2*C1) @ (2*C1, 8*C1).  Deconv1 bias is folded into the
    # BN2 shift; eval-mode BN2 + ReLU applied once on the wide block.
    z = jnp.dot(y, wt1_ref[...], precision=HP,
                preferred_element_type=jnp.float32)
    z = jnp.maximum(z * aff2_ref[0] + aff2_ref[1], 0.0)

    # Deconv2 (both branches, all 16 fine-pixel offsets) as one block-diagonal
    # NT matmul producing a channel-major, lane-dense (32, THW) result:
    #   o[r, hw] = sum_k w2t[r, k] * z[hw, k]
    o = lax.dot_general(w2t_ref[...], z, (((1,), (1,)), ((), ())),
                        precision=HP, preferred_element_type=jnp.float32)
    s = jax.nn.sigmoid(o + b2_ref[...])          # (32, THW)

    prob = s[:16, :]                             # prob branch, 16 group channels
    thr = s[16:, :]                              # thresh branch
    prob_ref[0] = prob
    # binarization: reciprocal(1 + exp(-k*(p - t))) == sigmoid(k*(p - t))
    bin_ref[0] = jax.nn.sigmoid(K_DB * (prob - thr))


# ------------------------------- wrapper ----------------------------------- #
def _row_tile(hw, target):
    """Largest multiple of 128 that divides hw and is <= target, else hw."""
    best = hw
    t = 128
    while t <= min(hw, target):
        if hw % t == 0:
            best = t
        t += 128
    return best


def dbhead_forward(x_nchw, fused, *, row_tile=128,
                   vmem_limit_bytes=48 * 1024 * 1024):
    w1f, aff1, wt1f, aff2, w2t, b2 = fused
    N, Cin, H, W = x_nchw.shape
    HW = H * W

    # im2col in bf16: (N, HW, 9*Cin), tap index d = 3*dy + dx, channel minor.
    x = jnp.transpose(x_nchw, (0, 2, 3, 1)).astype(jnp.bfloat16)       # NHWC
    xpad = jnp.pad(x, ((0, 0), (1, 1), (1, 1), (0, 0)))
    cols = [xpad[:, dy:dy + H, dx:dx + W, :]
            for dy in range(3) for dx in range(3)]
    xs = jnp.concatenate(cols, axis=-1).reshape(N, HW, 9 * Cin)

    THW = _row_tile(HW, row_tile)
    grid = (N, HW // THW)

    def const_spec(shape):
        nd = len(shape)
        return pl.BlockSpec(shape, lambda n, i, _nd=nd: (0,) * _nd)

    in_specs = [pl.BlockSpec((1, THW, 9 * Cin), lambda n, i: (n, i, 0)),
                const_spec(w1f.shape), const_spec(aff1.shape),
                const_spec(wt1f.shape), const_spec(aff2.shape),
                const_spec(w2t.shape), const_spec(b2.shape)]
    out_specs = (pl.BlockSpec((1, 16, THW), lambda n, i: (n, 0, i)),
                 pl.BlockSpec((1, 16, THW), lambda n, i: (n, 0, i)))
    out_shape = (jax.ShapeDtypeStruct((N, 16, HW), jnp.float32),
                 jax.ShapeDtypeStruct((N, 16, HW), jnp.float32))

    prob_g, bin_g = pl.pallas_call(
        dbhead_kernel,
        out_shape=out_shape,
        grid_spec=pltpu.PrefetchScalarGridSpec(
            num_scalar_prefetch=0,
            grid=grid,
            in_specs=in_specs,
            out_specs=out_specs),
        compiler_params=pltpu.CompilerParams(
            dimension_semantics=("parallel", "parallel"),
            vmem_limit_bytes=vmem_limit_bytes),
    )(xs, w1f, aff1, wt1f, aff2, w2t, b2)

    def ungroup(g):
        # channel r = 8*kh1 + 4*kw1 + 2*kh2 + kw2; pixel (4i+2kh1+kh2, 4j+2kw1+kw2)
        g = g.reshape(N, 2, 2, 2, 2, H, W)          # (n, kh1, kw1, kh2, kw2, i, j)
        g = g.transpose(0, 5, 1, 3, 6, 2, 4)        # (n, i, kh1, kh2, j, kw1, kw2)
        return g.reshape(N, 4 * H, 4 * W)[:, None, :, :]               # NCHW

    return {"prob_map": ungroup(prob_g), "binary_map": ungroup(bin_g)}


# --------------------------- parameter setup ------------------------------- #
def init_branch_params(key, cin, c1):
    k1, k2, k3, k4, k5 = jax.random.split(key, 5)
    # Conv2d(cin, c1, 3, bias=False), kaiming-style init, HWIO layout, bf16.
    w1 = (jax.random.normal(k1, (3, 3, cin, c1), jnp.float32)
          * np.sqrt(2.0 / (cin * 9))).astype(jnp.bfloat16)
    # BatchNorm2d (eval): gamma=1, beta=1e-4, running_mean=0, running_var=1
    bn1_scale = jnp.full((c1,), 1.0 / np.sqrt(1.0 + EPS_BN), jnp.float32)
    bn1_shift = jnp.full((c1,), 1e-4, jnp.float32)
    # ConvTranspose2d(c1, c1, 2, stride=2) -- PyTorch weight layout (ci, co, kh, kw)
    wt1_pt = jax.random.normal(k2, (c1, c1, 2, 2), jnp.float32) * np.sqrt(2.0 / (c1 * 4))
    bt1 = jax.random.normal(k3, (c1,), jnp.float32) * 0.1
    bn2_scale = jnp.full((c1,), 1.0 / np.sqrt(1.0 + EPS_BN), jnp.float32)
    bn2_shift = jnp.full((c1,), 1e-4, jnp.float32)
    # ConvTranspose2d(c1, 1, 2, stride=2)
    wt2_pt = jax.random.normal(k4, (c1, 1, 2, 2), jnp.float32) * np.sqrt(2.0 / (c1 * 4))
    bt2 = jax.random.normal(k5, (1,), jnp.float32) * 0.1
    return dict(w1=w1, bn1_scale=bn1_scale, bn1_shift=bn1_shift,
                wt1_pt=wt1_pt, bt1=bt1, bn2_scale=bn2_scale, bn2_shift=bn2_shift,
                wt2_pt=wt2_pt, bt2=bt2)


def _block_diag(blocks):
    rows = sum(b.shape[0] for b in blocks)
    cols = sum(b.shape[1] for b in blocks)
    out = jnp.zeros((rows, cols), blocks[0].dtype)
    r = c = 0
    for b in blocks:
        out = out.at[r:r + b.shape[0], c:c + b.shape[1]].set(b)
        r += b.shape[0]
        c += b.shape[1]
    return out


def fuse_params(pp, pt):
    """Fuse prob+thresh branch parameters into the packed kernel layout."""
    c1 = pp["w1"].shape[-1]
    cin = pp["w1"].shape[-2]

    # 3x3 conv, both branches: (9*Cin, 2*C1) bf16, row = d*Cin + ci, d = 3*dy+dx.
    w1f = jnp.concatenate([pp["w1"].reshape(9 * cin, c1),
                           pt["w1"].reshape(9 * cin, c1)], axis=1)

    # BN1 (eval) scale/shift over fused channels: (2, 2*C1) f32.
    aff1 = jnp.stack([jnp.concatenate([pp["bn1_scale"], pt["bn1_scale"]]),
                      jnp.concatenate([pp["bn1_shift"], pt["bn1_shift"]])])

    # Deconv1: per-branch (C1, 4*C1) with column = (2*kh1+kw1)*C1 + co,
    # block-diagonal across branches -> (2*C1, 8*C1) f32.
    def wt1_arranged(p):
        return jnp.transpose(p["wt1_pt"], (0, 2, 3, 1)).reshape(c1, 4 * c1)
    wt1f = _block_diag([wt1_arranged(pp), wt1_arranged(pt)]).astype(jnp.float32)

    # BN2 (eval) over the fused z layout [branch, (kh1,kw1), co], with the
    # deconv1 bias folded into the shift: (2, 8*C1) f32.
    def z_aff(p):
        sc = jnp.tile(p["bn2_scale"], 4)
        sh = jnp.tile(p["bt1"] * p["bn2_scale"] + p["bn2_shift"], 4)
        return sc, sh
    scp, shp = z_aff(pp)
    sct, sht = z_aff(pt)
    aff2 = jnp.stack([jnp.concatenate([scp, sct]), jnp.concatenate([shp, sht])])

    # Deconv2, channel-major ("transposed") weight: (32, 8*C1) f32,
    # row r = branch*16 + 8*kh1 + 4*kw1 + 2*kh2 + kw2, block-diag over (branch, kh1kw1).
    def w2t_branch(p):
        w = jnp.transpose(p["wt2_pt"][:, 0], (1, 2, 0)).reshape(4, c1)   # (t2, ci)
        return _block_diag([w, w, w, w])                                 # (16, 4*C1)
    w2t = _block_diag([w2t_branch(pp), w2t_branch(pt)]).astype(jnp.float32)

    b2 = jnp.concatenate([jnp.full((16, 1), pp["bt2"][0], jnp.float32),
                          jnp.full((16, 1), pt["bt2"][0], jnp.float32)])

    return (w1f, aff1, wt1f, aff2, w2t, b2)


# ------------------------- pure-JAX reference ------------------------------ #
def reference_forward(x_nchw, pp, pt, k=K_DB):
    HP = lax.Precision.HIGHEST

    def convT(x, w_pt, b):                                  # x NHWC f32
        w = jnp.transpose(w_pt, (2, 3, 0, 1))               # (kh, kw, ci, co)
        n, h, wid, _ = x.shape
        co = w.shape[-1]
        out = jnp.zeros((n, 2 * h, 2 * wid, co), jnp.float32)
        for kh in range(2):
            for kw in range(2):
                out = out.at[:, kh::2, kw::2, :].set(
                    jnp.einsum('nhwc,co->nhwo', x, w[kh, kw],
                               precision=HP,
                               preferred_element_type=jnp.float32))
        return out + b

    def branch(x_nhwc, p):
        y = lax.conv_general_dilated(
            x_nhwc, p["w1"], window_strides=(1, 1), padding=((1, 1), (1, 1)),
            dimension_numbers=('NHWC', 'HWIO', 'NHWC'),
            preferred_element_type=jnp.float32)
        y = jnp.maximum(y * p["bn1_scale"] + p["bn1_shift"], 0.0)
        z = convT(y, p["wt1_pt"], p["bt1"])
        z = jnp.maximum(z * p["bn2_scale"] + p["bn2_shift"], 0.0)
        o = convT(z, p["wt2_pt"], p["bt2"])
        return jax.nn.sigmoid(o)

    x = jnp.transpose(x_nchw, (0, 2, 3, 1)).astype(jnp.bfloat16)
    prob = branch(x, pp)
    thr = branch(x, pt)
    binary = jax.nn.sigmoid(k * (prob - thr))
    to_nchw = lambda t: jnp.transpose(t, (0, 3, 1, 2))
    return {"prob_map": to_nchw(prob), "binary_map": to_nchw(binary)}


# ---------------------------------- main ----------------------------------- #
if __name__ == "__main__":
    N, exp_ch, H, W = 2, 8, 16, 16       # DBHead(k=50, exp=8, adaptive=True)
    c1 = exp_ch // 4
    key = jax.random.PRNGKey(0)
    kx, kp, kt = jax.random.split(key, 3)
    x = jax.random.normal(kx, (N, exp_ch, H, W), jnp.float32).astype(jnp.bfloat16)

    pp = init_branch_params(kp, exp_ch, c1)
    pt = init_branch_params(kt, exp_ch, c1)
    fused = fuse_params(pp, pt)

    out = dbhead_forward(x, fused)
    out = jax.block_until_ready(out)

    assert out["prob_map"].shape == (N, 1, 4 * H, 4 * W)
    assert out["binary_map"].shape == (N, 1, 4 * H, 4 * W)

    ref = reference_forward(x, pp, pt)
    np.testing.assert_allclose(np.asarray(out["prob_map"]),
                               np.asarray(ref["prob_map"]), rtol=2e-3, atol=2e-3)
    np.testing.assert_allclose(np.asarray(out["binary_map"]),
                               np.asarray(ref["binary_map"]), rtol=2e-3, atol=2e-3)

    print("KERNEL_OK")
</pallas_src>

<mosaic_0001>
module attributes {stable_mosaic.version = 11 : i64} {
  func.func @dbhead_kernel(%arg0: i32, %arg1: i32, %arg2: memref<1x128x72xbf16, #tpu.memory_space<vmem>>, %arg3: memref<72x4xbf16, #tpu.memory_space<vmem>>, %arg4: memref<2x4xf32, #tpu.memory_space<vmem>>, %arg5: memref<4x16xf32, #tpu.memory_space<vmem>>, %arg6: memref<2x16xf32, #tpu.memory_space<vmem>>, %arg7: memref<32x16xf32, #tpu.memory_space<vmem>>, %arg8: memref<32x1xf32, #tpu.memory_space<vmem>>, %arg9: memref<1x16x128xf32, #tpu.memory_space<vmem>>, %arg10: memref<1x16x128xf32, #tpu.memory_space<vmem>>) attributes {dimension_semantics = [#tpu.dimension_semantics<parallel>, #tpu.dimension_semantics<parallel>], iteration_bounds = array<i64: 2, 2>, scalar_prefetch = 0 : i64, scratch_operands = 0 : i64, tpu.core_type = #tpu.core_type<tc>, window_params = [{transform_indices = @transform_0, window_bounds = array<i64: 1, 128, 72>}, {pipeline_mode = #tpu.pipeline_mode<synchronous>, transform_indices = @transform_1, window_bounds = array<i64: 72, 4>}, {pipeline_mode = #tpu.pipeline_mode<synchronous>, transform_indices = @transform_2, window_bounds = array<i64: 2, 4>}, {pipeline_mode = #tpu.pipeline_mode<synchronous>, transform_indices = @transform_3, window_bounds = array<i64: 4, 16>}, {pipeline_mode = #tpu.pipeline_mode<synchronous>, transform_indices = @transform_4, window_bounds = array<i64: 2, 16>}, {pipeline_mode = #tpu.pipeline_mode<synchronous>, transform_indices = @transform_5, window_bounds = array<i64: 32, 16>}, {pipeline_mode = #tpu.pipeline_mode<synchronous>, transform_indices = @transform_6, window_bounds = array<i64: 32, 1>}, {transform_indices = @transform_7, window_bounds = array<i64: 1, 16, 128>}, {transform_indices = @transform_8, window_bounds = array<i64: 1, 16, 128>}]} {
    %c0 = arith.constant 0 : index
    %c0_0 = arith.constant 0 : index
    %c0_1 = arith.constant 0 : index
    %0 = vector.load %arg2[%c0, %c0_0, %c0_1] : memref<1x128x72xbf16, #tpu.memory_space<vmem>>, vector<1x128x72xbf16>
    %1 = vector.shape_cast %0 : vector<1x128x72xbf16> to vector<128x72xbf16>
    %c0_2 = arith.constant 0 : index
    %c0_3 = arith.constant 0 : index
    %2 = vector.load %arg3[%c0_2, %c0_3] : memref<72x4xbf16, #tpu.memory_space<vmem>>, vector<72x4xbf16>
    %cst = arith.constant dense<0.000000e+00> : vector<128x4xf32>
    %3 = tpu.matmul %1, %2, %cst {dimension_numbers = #tpu.dot_dimension_numbers<[1], [0], [0], [1], [0, 0, 1, 1], [], []>} : vector<128x72xbf16>, vector<72x4xbf16>, vector<128x4xf32> -> vector<128x4xf32>
    %c0_4 = arith.constant 0 : index
    %c0_5 = arith.constant 0 : index
    %4 = vector.load %arg4[%c0_4, %c0_5] : memref<2x4xf32, #tpu.memory_space<vmem>>, vector<1x4xf32>
    %5 = vector.shape_cast %4 : vector<1x4xf32> to vector<4xf32>
    %6 = vector.shape_cast %5 : vector<4xf32> to vector<1x4xf32>
    %7 = vector.broadcast %6 : vector<1x4xf32> to vector<128x4xf32>
    %8 = arith.mulf %3, %7 : vector<128x4xf32>
    %c1 = arith.constant 1 : index
    %c0_6 = arith.constant 0 : index
    %9 = vector.load %arg4[%c1, %c0_6] : memref<2x4xf32, #tpu.memory_space<vmem>>, vector<1x4xf32>
    %10 = vector.shape_cast %9 : vector<1x4xf32> to vector<4xf32>
    %11 = vector.shape_cast %10 : vector<4xf32> to vector<1x4xf32>
    %12 = vector.broadcast %11 : vector<1x4xf32> to vector<128x4xf32>
    %13 = arith.addf %8, %12 : vector<128x4xf32>
    %cst_7 = arith.constant 0.000000e+00 : f32
    %14 = vector.broadcast %cst_7 : f32 to vector<128x4xf32>
    %15 = arith.maximumf %13, %14 : vector<128x4xf32>
    %c0_8 = arith.constant 0 : index
    %c0_9 = arith.constant 0 : index
    %16 = vector.load %arg5[%c0_8, %c0_9] : memref<4x16xf32, #tpu.memory_space<vmem>>, vector<4x16xf32>
    %cst_10 = arith.constant dense<0.000000e+00> : vector<128x16xf32>
    %17 = tpu.matmul %15, %16, %cst_10 {dimension_numbers = #tpu.dot_dimension_numbers<[1], [0], [0], [1], [0, 0, 1, 1], [], []>, precision = #tpu.contract_precision<fp32>} : vector<128x4xf32>, vector<4x16xf32>, vector<128x16xf32> -> vector<128x16xf32>
    %c0_11 = arith.constant 0 : index
    %c0_12 = arith.constant 0 : index
    %18 = vector.load %arg6[%c0_11, %c0_12] : memref<2x16xf32, #tpu.memory_space<vmem>>, vector<1x16xf32>
    %19 = vector.shape_cast %18 : vector<1x16xf32> to vector<16xf32>
    %20 = vector.shape_cast %19 : vector<16xf32> to vector<1x16xf32>
    %21 = vector.broadcast %20 : vector<1x16xf32> to vector<128x16xf32>
    %22 = arith.mulf %17, %21 : vector<128x16xf32>
    %c1_13 = arith.constant 1 : index
    %c0_14 = arith.constant 0 : index
    %23 = vector.load %arg6[%c1_13, %c0_14] : memref<2x16xf32, #tpu.memory_space<vmem>>, vector<1x16xf32>
    %24 = vector.shape_cast %23 : vector<1x16xf32> to vector<16xf32>
    %25 = vector.shape_cast %24 : vector<16xf32> to vector<1x16xf32>
    %26 = vector.broadcast %25 : vector<1x16xf32> to vector<128x16xf32>
    %27 = arith.addf %22, %26 : vector<128x16xf32>
    %cst_15 = arith.constant 0.000000e+00 : f32
    %28 = vector.broadcast %cst_15 : f32 to vector<128x16xf32>
    %29 = arith.maximumf %27, %28 : vector<128x16xf32>
    %c0_16 = arith.constant 0 : index
    %c0_17 = arith.constant 0 : index
    %30 = vector.load %arg7[%c0_16, %c0_17] : memref<32x16xf32, #tpu.memory_space<vmem>>, vector<32x16xf32>
    %cst_18 = arith.constant dense<0.000000e+00> : vector<32x128xf32>
    %31 = tpu.matmul %30, %29, %cst_18 {dimension_numbers = #tpu.dot_dimension_numbers<[1], [1], [0], [0], [0, 0, 1, 0], [], []>, precision = #tpu.contract_precision<fp32>} : vector<32x16xf32>, vector<128x16xf32>, vector<32x128xf32> -> vector<32x128xf32>
    %c0_19 = arith.constant 0 : index
    %c0_20 = arith.constant 0 : index
    %32 = vector.load %arg8[%c0_19, %c0_20] : memref<32x1xf32, #tpu.memory_space<vmem>>, vector<32x1xf32>
    %33 = vector.broadcast %32 : vector<32x1xf32> to vector<32x128xf32>
    %34 = arith.addf %31, %33 : vector<32x128xf32>
    %35 = arith.negf %34 : vector<32x128xf32>
    %36 = math.exp %35 : vector<32x128xf32>
    %cst_21 = arith.constant 1.000000e+00 : f32
    %37 = vector.broadcast %cst_21 : f32 to vector<32x128xf32>
    %38 = arith.addf %37, %36 : vector<32x128xf32>
    %39 = arith.divf %37, %38 : vector<32x128xf32>
    %40 = vector.extract_strided_slice %39 {offsets = [0, 0], sizes = [16, 128], strides = [1, 1]} : vector<32x128xf32> to vector<16x128xf32>
    %41 = vector.extract_strided_slice %39 {offsets = [16, 0], sizes = [16, 128], strides = [1, 1]} : vector<32x128xf32> to vector<16x128xf32>
    %c0_22 = arith.constant 0 : index
    %c0_23 = arith.constant 0 : index
    %c0_24 = arith.constant 0 : index
    %42 = vector.load %arg9[%c0_22, %c0_23, %c0_24] : memref<1x16x128xf32, #tpu.memory_space<vmem>>, vector<1x16x128xf32>
    %43 = vector.shape_cast %42 : vector<1x16x128xf32> to vector<16x128xf32>
    %44 = vector.shape_cast %40 : vector<16x128xf32> to vector<1x16x128xf32>
    tpu.vector_store %arg9[%c0_22, %c0_23, %c0_24], %44 {strides = array<i32>} : memref<1x16x128xf32, #tpu.memory_space<vmem>>, vector<1x16x128xf32>,
    %45 = arith.subf %40, %41 : vector<16x128xf32>
    %cst_25 = arith.constant 5.000000e+01 : f32
    %46 = vector.broadcast %cst_25 : f32 to vector<16x128xf32>
    %47 = arith.mulf %46, %45 : vector<16x128xf32>
    %48 = arith.negf %47 : vector<16x128xf32>
    %49 = math.exp %48 : vector<16x128xf32>
    %cst_26 = arith.constant 1.000000e+00 : f32
    %50 = vector.broadcast %cst_26 : f32 to vector<16x128xf32>
    %51 = arith.addf %50, %49 : vector<16x128xf32>
    %52 = arith.divf %50, %51 : vector<16x128xf32>
    %c0_27 = arith.constant 0 : index
    %c0_28 = arith.constant 0 : index
    %c0_29 = arith.constant 0 : index
    %53 = vector.load %arg10[%c0_27, %c0_28, %c0_29] : memref<1x16x128xf32, #tpu.memory_space<vmem>>, vector<1x16x128xf32>
    %54 = vector.shape_cast %53 : vector<1x16x128xf32> to vector<16x128xf32>
    %55 = vector.shape_cast %52 : vector<16x128xf32> to vector<1x16x128xf32>
    tpu.vector_store %arg10[%c0_27, %c0_28, %c0_29], %55 {strides = array<i32>} : memref<1x16x128xf32, #tpu.memory_space<vmem>>, vector<1x16x128xf32>,
    return
  }
  func.func @transform_0(%arg0: i32, %arg1: i32) -> (i32, i32, i32) {
    %c0_i32 = arith.constant 0 : i32
    %c0_i32_0 = arith.constant 0 : i32
    return %arg0, %arg1, %c0_i32 : i32, i32, i32
  }
  func.func @transform_1(%arg0: i32, %arg1: i32) -> (i32, i32) {
    %c0_i32 = arith.constant 0 : i32
    %c0_i32_0 = arith.constant 0 : i32
    %c0_i32_1 = arith.constant 0 : i32
    return %c0_i32, %c0_i32_0 : i32, i32
  }
  func.func @transform_2(%arg0: i32, %arg1: i32) -> (i32, i32) {
    %c0_i32 = arith.constant 0 : i32
    %c0_i32_0 = arith.constant 0 : i32
    %c0_i32_1 = arith.constant 0 : i32
    return %c0_i32, %c0_i32_0 : i32, i32
  }
  func.func @transform_3(%arg0: i32, %arg1: i32) -> (i32, i32) {
    %c0_i32 = arith.constant 0 : i32
    %c0_i32_0 = arith.constant 0 : i32
    %c0_i32_1 = arith.constant 0 : i32
    return %c0_i32, %c0_i32_0 : i32, i32
  }
  func.func @transform_4(%arg0: i32, %arg1: i32) -> (i32, i32) {
    %c0_i32 = arith.constant 0 : i32
    %c0_i32_0 = arith.constant 0 : i32
    %c0_i32_1 = arith.constant 0 : i32
    return %c0_i32, %c0_i32_0 : i32, i32
  }
  func.func @transform_5(%arg0: i32, %arg1: i32) -> (i32, i32) {
    %c0_i32 = arith.constant 0 : i32
    %c0_i32_0 = arith.constant 0 : i32
    %c0_i32_1 = arith.constant 0 : i32
    return %c0_i32, %c0_i32_0 : i32, i32
  }
  func.func @transform_6(%arg0: i32, %arg1: i32) -> (i32, i32) {
    %c0_i32 = arith.constant 0 : i32
    %c0_i32_0 = arith.constant 0 : i32
    %c0_i32_1 = arith.constant 0 : i32
    return %c0_i32, %c0_i32_0 : i32, i32
  }
  func.func @transform_7(%arg0: i32, %arg1: i32) -> (i32, i32, i32) {
    %c0_i32 = arith.constant 0 : i32
    %c0_i32_0 = arith.constant 0 : i32
    return %arg0, %c0_i32, %arg1 : i32, i32, i32
  }
  func.func @transform_8(%arg0: i32, %arg1: i32) -> (i32, i32, i32) {
    %c0_i32 = arith.constant 0 : i32
    %c0_i32_0 = arith.constant 0 : i32
    return %arg0, %c0_i32, %arg1 : i32, i32, i32
  }
}

</mosaic_0001>

<bundles_post_ra>
// kernel: tpu_custom_call.1
= control target key start
LH: loop header
LB: loop body
LE: loop exit
PB: predicated region body
PF: predicated region fallthrough
CT: control target
= control target key end

     0   :  { %s5073_s0 = inlined_call_operand.vmem [shape: bf16[2,256,72], index: 0, kind: input, shape index: {}]   ;;  %s5074_s1 = inlined_call_operand.vmem [shape: bf16[72,4], index: 1, kind: input, shape index: {}]   ;;  %s5075_s2 = inlined_call_operand.vmem [shape: f32[2,4], index: 2, kind: input, shape index: {}]   ;;  %s5076_s3 = inlined_call_operand.vmem [shape: f32[4,16], index: 3, kind: input, shape index: {}]   ;;  %s5077_s4 = inlined_call_operand.vmem [shape: f32[2,16], index: 4, kind: input, shape index: {}]   ;;  %s5078_s5 = inlined_call_operand.vmem [shape: f32[32,16], index: 5, kind: input, shape index: {}]   ;;  %s5079_s6 = inlined_call_operand.vmem [shape: f32[32,1], index: 6, kind: input, shape index: {}]   ;;  %s5080_s7 = inlined_call_operand.hbm [shape: f32[2,16,256], index: 7, kind: output, shape index: {0}]   ;;  %s5081_s8 = inlined_call_operand.hbm [shape: f32[2,16,256], index: 8, kind: output, shape index: {1}]  }
   0x1   :  { %5086 = sst [smem:[#allocation9_spill]] %s5076_s3 }
   0x2   :  { %14 = vsyncpa [#allocation3], 0 }
   0x3   :  { %16 = vsyncpa [#allocation3 + $0x1], 0 }
   0x4   :  { %17 = vsyncpa [#allocation5], 0 }
   0x5   :  { %19 = vsyncpa [#allocation5 + $0x1], 0  ;;  %s4170_s27 = smov 0   ;;  %s4172_s28 = smov 0  }
   0x6   :  { %s4174_s29 = smov 0   ;;  %s4176_s30 = smov 0  }
   0x7   :  { %s4178_s9 = smov 0   ;;  %s4180_s10 = smov 0  }
   0x8   :  { %s4182_s11 = smov 0   ;;  %s4184_s12 = smov 0  }
   0x9 LB: > { %s2881_s13 = sadd.s32 4294967295, %s4117_s12   ;;  %s2882_s14 = sadd.s32 4294967294, %s4117_s12   ;;  %s4117_s12 = sphi %s4184_s12, %s25_s12   ;;  %s4113_s11 = sphi %s4182_s11, %s5103_s11   ;;  %s4109_s10 = sphi %s4180_s10, %s5102_s10   ;;  %s4105_s9 = sphi %s4178_s9, %s5101_s9   ;;  %s4101_s30 = sphi %s4176_s30, %s5100_s30   ;;  %s4097_s29 = sphi %s4174_s29, %s5099_s29   ;;  %s4093_s28 = sphi %s4172_s28, %s5098_s28   ;;  %s4089_s27 = sphi %s4170_s27, %s5097_s27  }
   0xa   : > { %s34_s15 = sadd.s32 1, %s4109_s10  ;;  %s37_s16 = sadd.s32 1, %s4113_s11 }
   0xb   : > { %p35_p0 = scmp.ge.s32.totalorder %s34_s15, 2  ;;  %p210_p1 = scmp.ne.s32.totalorder %s4097_s29, %s4093_s28 }
   0xc   : > { %p211_p2 = scmp.eq.s32.totalorder %s2881_s13, 3  ;;  %p216_p5 = scmp.ne.s32.totalorder %s4093_s28, %s4089_s27 }
   0xd   : > { %s5105_s15 = smov (%p35_p0, %s34_s15), 0  ;;  %s5107_s16 = smov (!%p35_p0, %s37_s16), %s4113_s11 }
   0xe   : > { %s196_s17 = ssub.s32 %s4109_s10, %s5105_s15  ;;  %p4221_p3 = por %p211_p2, %p210_p1 }
   0xf   : > { %p39_p4 = scmp.ge.s32.totalorder %s5107_s16, 2  ;;  %p217_p6 = scmp.eq.s32.totalorder %s2882_s14, 3 }
  0x10   : > { %p2885_p7 = scmp.ge.s32.totalorder %s4117_s12, 1  ;;  %p294_p9 = scmp.lt.s32.totalorder %s4117_s12, 5 }
  0x11   : > { %s5109_s16 = smov (%p39_p4, %s5107_s16), 0  ;;  %p4230_p8 = por %p217_p6, %p216_p5 }
  0x12   : > { %5088 = sst [smem:[#allocation8_spill]] %s5109_s16  ;;  %s195_s20 = ssub.s32 %s4113_s11, %s5109_s16 }
  0x13   : > { %s200_s21 = sadd.s32 1, %s4097_s29  ;;  %s197_s22 = sor.u32 %s196_s17, %s195_s20 }
  0x14   : > { %p295_p10 = pnand %p2885_p7, %p294_p9  ;;  %p198_p11 = scmp.eq.s32.totalorder %s197_s22, 0 }
  0x15   : > { %v3954_v0 = vld [vmem:[%s5074_s1] sm:$0xff] (!%p295_p10)   ;;  %v3955_v1 = vld [vmem:[%s5074_s1 + $0x8] sm:$0xff] (!%p295_p10)   ;;  %s2888_s14 = sshll.u32 (!%p295_p10), %s4101_s30, 4  ;;  %p338_p12 = scmp.lt.s32.totalorder (!%p295_p10), %s4105_s9, 1  ;;  %v3956_v2 = vld [vmem:[%s5074_s1 + $0x10] sm:$0xff] (!%p295_p10)   ;;  %vm465_vm0 = vcmask (!%p295_p10), 1043456  }
  0x16   : > { %s4239_s23 = scalar_select %p198_p11, %s4097_s29, %s200_s21  }
  0x17   : > { %298 = sbr.rel (%p295_p10) target bundleno = 1222 (0x4c6), region = 48  ;;  %3165 = vmatprep.subr.bf16.mxu0 (!%p295_p10), %v3954_v0  ;;  %p340_p13 = scmp.lt.s32.totalorder (!%p295_p10), %s2888_s14, 31  ;;  %v3957_v6 = vld [vmem:[%s5074_s1 + $0x18] sm:$0xff] (!%p295_p10)   ;;  %vm440_vm1 = vcmask (!%p295_p10), 588800   ;;  %v3958_v8 = vld [vmem:[%s5074_s1 + $0x20] ss:$0 sps:$4 sm:$0xff] (!%p295_p10)  }
  0x18   : > { %3166 = vmatpush3.bf16.msra.mxu0 (!%p295_p10), %v3954_v0  ;;  %s5090_s3 = sld [smem:[#allocation9_spill]] (!%p295_p10)  ;;  %v467_v9 = vsel (!%p295_p10), %vm465_vm0, %v3958_v8, 0  ;;  %v4294_v21 = vld [vmem:[%s5075_s2] ss:$0 sm:$0xff] (!%p295_p10)  ;;  %v4299_v23 = vld [vmem:[%s5075_s2 + $0x1] ss:$0 sm:$0xff] (!%p295_p10) }
  0x19   : > { %3167 = vmatprep.subr.bf16.mxu0 (!%p295_p10), %v3955_v1  ;;  %vm625_vm2 = vcmask (!%p295_p10), 31744   ;;  %vm1854_vm3 = vcmask (!%p295_p10), 130048  }
  0x1c   : > { %3168 = vmatpush3.bf16.msra.mxu0 (!%p295_p10), %v3955_v1 }
  0x1d   : > { %3169 = vmatprep.subr.bf16.mxu0 (!%p295_p10), %v3956_v2 }
  0x1e   : > { %v624_v3 = vld [vmem:[%s5090_s3] sm:$0xf]  ;;  %s339_s24 = scalar_select %p338_p12, %s4105_s9, 1 }
  0x1f   : > { %v675_v4 = vsel %vm465_vm0, %v624_v3, 0  ;;  %s5111_s14 = smov (!%p340_p13, %s2888_s14), 31 }
  0x20   : > { %v4257_v5 = vand.u32 4294901760, %v675_v4  ;;  %s2889_s25 = sshll.u32 %s339_s24, 5  ;;  %3170 = vmatpush3.bf16.msra.mxu0 %v3956_v2 }
  0x21   : > { %s343_s17 = sadd.s32 %s2889_s25, %s5111_s14  ;;  %3171 = vmatprep.subr.bf16.mxu0 %v3957_v6  ;;  %s2924_s25 = sshll.u32 %s4105_s9, 2 }
  0x22   : > { %3191 = vmatprep.subr.mxu1 %v4257_v5  ;;  %s2890_s20 = sshll.u32 %s343_s17, 2  ;;  %v4281_v17 = vsub.f32 %v675_v4, %v4257_v5  ;;  %s4966_s13 = sadd.s32 %s4101_s30, %s2924_s25 }
  0x23   : > { %3192 = vmatpush3.msra.mxu1 %v4257_v5  ;;  %s345_s3 = scalar_lea.vmem %s5073_s0, %s2890_s20  ;;  %s5083_s17 = sshll.u32 %s4966_s13, 7 }
  0x24   : > { %v3959_v7 = vld [vmem:[%s345_s3] sm:$0xff]   ;;  %3172 = vmatpush3.bf16.msra.mxu0 %v3957_v6  ;;  %v3960_v10 = vld [vmem:[%s345_s3 + $0x8] sm:$0xff]   ;;  %v3961_v11 = vld [vmem:[%s345_s3 + $0x10] sm:$0xff]   ;;  %v4284_v18 = vand.u32 4294901760, %v4281_v17  ;;  %s4976_s24 = scalar_lea.hbm %s5080_s7, %s5083_s17  ;;  %s4120_s14 = smov [#allocation2]  }
  0x25   : > { %3175 = vmatprep.mubr.msk.bf16.mxu0 %vm440_vm1, %v3959_v7  ;;  %3871 = vmatprep.subr.msk.bf16.mxu0 %vm465_vm0, %v3958_v8  ;;  %v3962_v12 = vld [vmem:[%s345_s3 + $0x18] sm:$0xff]   ;;  %v3963_v13 = vld [vmem:[%s345_s3 + $0x20] sm:$0xff]   ;;  %v3964_v14 = vld [vmem:[%s345_s3 + $0x28] sm:$0xff]   ;;  %s3995_s25 = sshll.u32 %s4120_s14, 4  ;;  %s3996_s25 = int_to_ptr.vmem [resolvable:$false] %s3995_s25 }
  0x26   : > { %v3965_v15 = vld [vmem:[%s345_s3 + $0x30] sm:$0xff]   ;;  %v3966_v16 = vld [vmem:[%s345_s3 + $0x38] sm:$0xff]   ;;  %v907_v19 = vsub.f32 %v4281_v17, %v4284_v18  ;;  %s4961_s3 = sand.u32 1, %s4093_s28   ;;  %s3997_s9 = scalar_lea.vmem %s3996_s25, 512 }
  0x27   : > { %s5084_s26 = sshll.u32 %s4961_s3, 4 }
  0x28   : > { %3174 = vmatpush3.bf16.msra.mxu0 %v467_v9  ;;  %v4288_v20 = vand.u32 4294901760, %v907_v19  ;;  %s329_s20 = scalar_lea.vmem [#allocation2], %s5084_s26 }
  0x29   : > { %s2749_s21 = sshll.u32 %s329_s20, 4  ;;  %s4978_s21 = int_to_ptr.vmem [resolvable:$true] %s2749_s21 }
  0x2a   : > { %3217 = vmatprep.subr.mxu1 %v4288_v20  ;;  %s3991_s16 = scalar_lea.vmem %s4978_s21, 256  ;;  %p3998_p4 = scmp.lt.s32.totalorder %s4978_s21, %s3996_s25 }
  0x2b   : > { %3176 = vmatmul.mubr.msk.bf16.vlgmr.msra.gmra.mrb[0].mxu0 %vm440_vm1, %v3960_v10  ;;  %p3992_p0 = scmp.ne.s32.totalorder %s4978_s21, %s3991_s16  ;;  %p3999_p5 = scmp.lt.s32.totalorder %s3997_s9, %s3991_s16 }
  0x2c   : > { %3179 = vmatprep.mubr.msk.bf16.mxu0 %vm440_vm1, %v3961_v11 }
  0x2d   : > { %p3993_p1 = pnand %p3992_p0, %p4221_p3  ;;  %p4000_p6 = por %p3999_p5, %p3998_p4 }
  0x2f   : > { %p3994_p2 = pneg %p3993_p1 }
  0x31   : > { %p4001_p7 = pnand %p4000_p6, %p3994_p2 }
  0x33   : > { %3180 = vmatmul.mubr.msk.bf16.gmra.mrb[4].mxu0 %vm440_vm1, %v3962_v12 }
  0x34   : > { %3183 = vmatprep.mubr.msk.bf16.mxu0 %vm440_vm1, %v3963_v13 }
  0x3b   : > { %3184 = vmatmul.mubr.msk.bf16.gmra.mrb[8].mxu0 %vm440_vm1, %v3964_v14 }
  0x3c   : > { %3187 = vmatprep.mubr.msk.bf16.mxu0 %vm440_vm1, %v3965_v15 }
  0x43   : > { %3188 = vmatmul.mubr.msk.bf16.gmra.mrb[12].mxu0 %vm440_vm1, %v3966_v16 }
  0xfe   : > { %v3177_v22 = vpop.f32.mrb[0].mxu0 }
  0xff   : > { %v573_v24 = vmul.f32 %v3177_v22, %v4294_v21  ;;  %v503_v25 = vpop.f32.mrb[1].mxu0 }
 0x100   : > { %v571_v26 = vmul.f32 %v4294_v21, %v503_v25  ;;  %v3178_v27 = vpop.f32.mrb[2].mxu0 }
 0x101   : > { %v594_v28 = vadd.f32 %v4299_v23, %v573_v24  ;;  %v574_v29 = vmul.f32 %v3178_v27, %v4294_v21  ;;  %v506_v30 = vpop.f32.mrb[3].mxu0 }
 0x102   : > { %v592_v31 = vadd.f32 %v4299_v23, %v571_v26  ;;  %v572_v32 = vmul.f32 %v4294_v21, %v506_v30 }
 0x103   : > { %v610_v33 = vmax.f32 %v594_v28, 0.0  ;;  %v595_v34 = vadd.f32 %v4299_v23, %v574_v29 }
 0x104   : > { %v608_v35 = vmax.f32 %v592_v31, 0.0  ;;  %v593_v36 = vadd.f32 %v4299_v23, %v572_v32 }
 0x105   : > { %v633_v37 = vsel %vm625_vm2, %v610_v33, 0  ;;  %v611_v38 = vmax.f32 %v595_v34, 0.0 }
 0x106   : > { %v4310_v39 = vand.u32 4294901760, %v633_v37  ;;  %v627_v40 = vsel %vm625_vm2, %v608_v35, 0  ;;  %v609_v41 = vmax.f32 %v593_v36, 0.0  ;;  %v3181_v42 = vpop.f32.mrb[4].mxu0 }
 0x107   : > { %v4313_v43 = vand.u32 4294901760, %v627_v40  ;;  %v636_v44 = vsel %vm625_vm2, %v611_v38, 0  ;;  %v577_v45 = vmul.f32 %v3181_v42, %v4294_v21  ;;  %v519_v46 = vpop.f32.mrb[5].mxu0 }
 0x108   : > { %v4318_v47 = vsub.f32 %v633_v37, %v4310_v39  ;;  %v4320_v48 = vand.u32 4294901760, %v636_v44  ;;  %v630_v49 = vsel %vm625_vm2, %v609_v41, 0  ;;  %v575_v50 = vmul.f32 %v4294_v21, %v519_v46  ;;  %v3182_v51 = vpop.f32.mrb[6].mxu0 }
 0x109   : > { %v4324_v52 = vand.u32 4294901760, %v630_v49  ;;  %v598_v53 = vadd.f32 %v4299_v23, %v577_v45  ;;  %v578_v54 = vmul.f32 %v3182_v51, %v4294_v21  ;;  %v522_v55 = vpop.f32.mrb[7].mxu0  ;;  %v4329_v56 = vsub.f32 %v627_v40, %v4313_v43 }
 0x10a   : > { %v4332_v57 = vsub.f32 %v636_v44, %v4320_v48  ;;  %v596_v58 = vadd.f32 %v4299_v23, %v575_v50  ;;  %v576_v59 = vmul.f32 %v4294_v21, %v522_v55  ;;  %v765_v60 = vand.u32 4294901760, %v4318_v47 }
 0x10b   : > { %v4338_v61 = vsub.f32 %v630_v49, %v4324_v52  ;;  %v614_v62 = vmax.f32 %v598_v53, 0.0  ;;  %v599_v63 = vadd.f32 %v4299_v23, %v578_v54  ;;  %v745_v0 = vand.u32 4294901760, %v4329_v56 }
 0x10c   : > { %v612_v1 = vmax.f32 %v596_v58, 0.0  ;;  %v597_v2 = vadd.f32 %v4299_v23, %v576_v59  ;;  %v766_v3 = vsub.f32 %v4318_v47, %v765_v60  ;;  %v775_v4 = vand.u32 4294901760, %v4332_v57 }
 0x10d   : > { %v645_v6 = vsel %vm625_vm2, %v614_v62, 0  ;;  %v615_v7 = vmax.f32 %v599_v63, 0.0  ;;  %v746_v8 = vsub.f32 %v4329_v56, %v745_v0  ;;  %v755_v9 = vand.u32 4294901760, %v4338_v61 }
 0x10e   : > { %v4352_v10 = vand.u32 4294901760, %v645_v6  ;;  %v639_v11 = vsel %vm625_vm2, %v612_v1, 0  ;;  %v613_v12 = vmax.f32 %v597_v2, 0.0  ;;  %v3185_v13 = vpop.f32.mrb[8].mxu0  ;;  %v767_v14 = vand.u32 4294901760, %v766_v3 }
 0x10f   : > { %v4355_v15 = vand.u32 4294901760, %v639_v11  ;;  %v648_v16 = vsel %vm625_vm2, %v615_v7, 0  ;;  %v581_v19 = vmul.f32 %v3185_v13, %v4294_v21  ;;  %v535_v22 = vpop.f32.mrb[9].mxu0  ;;  %v747_v24 = vand.u32 4294901760, %v746_v8 }
 0x110   : > { %v4360_v25 = vsub.f32 %v645_v6, %v4352_v10  ;;  %v4362_v26 = vand.u32 4294901760, %v648_v16  ;;  %v642_v27 = vsel %vm625_vm2, %v613_v12, 0  ;;  %v579_v28 = vmul.f32 %v4294_v21, %v535_v22  ;;  %v3186_v29 = vpop.f32.mrb[10].mxu0 }
 0x111   : > { %v4367_v30 = vsub.f32 %v639_v11, %v4355_v15  ;;  %v4369_v31 = vand.u32 4294901760, %v642_v27  ;;  %v602_v32 = vadd.f32 %v4299_v23, %v581_v19  ;;  %v582_v33 = vmul.f32 %v3186_v29, %v4294_v21  ;;  %v538_v34 = vpop.f32.mrb[11].mxu0  ;;  %3193 = vmatprep.mubr.f32.mxu1 %v747_v24 }
 0x112   : > { %v4374_v35 = vsub.f32 %v648_v16, %v4362_v26  ;;  %v600_v36 = vadd.f32 %v4299_v23, %v579_v28  ;;  %v580_v37 = vmul.f32 %v4294_v21, %v538_v34  ;;  %v756_v38 = vsub.f32 %v4338_v61, %v755_v9 }
 0x113   : > { %v4382_v40 = vsub.f32 %v642_v27, %v4369_v31  ;;  %v618_v41 = vmax.f32 %v602_v32, 0.0  ;;  %v603_v42 = vadd.f32 %v4299_v23, %v582_v33  ;;  %v776_v44 = vsub.f32 %v4332_v57, %v775_v4 }
 0x114   : > { %v616_v45 = vmax.f32 %v600_v36, 0.0  ;;  %v601_v46 = vadd.f32 %v4299_v23, %v580_v37  ;;  %v757_v49 = vand.u32 4294901760, %v756_v38  ;;  %v785_v50 = vand.u32 4294901760, %v4367_v30 }
 0x115   : > { %v657_v51 = vsel %vm625_vm2, %v618_v41, 0  ;;  %v619_v53 = vmax.f32 %v603_v42, 0.0  ;;  %v777_v54 = vand.u32 4294901760, %v776_v44  ;;  %v795_v55 = vand.u32 4294901760, %v4382_v40 }
 0x116   : > { %v4392_v58 = vand.u32 4294901760, %v657_v51  ;;  %v651_v59 = vsel %vm625_vm2, %v616_v45, 0  ;;  %v617_v62 = vmax.f32 %v601_v46, 0.0  ;;  %3194 = vmatmul.mubr.f32.vlgmr.msra.gmra.mrb[0].mxu1 %v757_v49  ;;  %v3189_v63 = vpop.f32.mrb[12].mxu0  ;;  %v786_v1 = vsub.f32 %v4367_v30, %v785_v50 }
 0x117   : > { %v4398_v2 = vand.u32 4294901760, %v651_v59  ;;  %v660_v3 = vsel %vm625_vm2, %v619_v53, 0  ;;  %3218 = vmatpush3.msra.mxu1 %v4288_v20  ;;  %3196 = vmatprep.mubr.f32.mxu1 %v767_v14  ;;  %v585_v6 = vmul.f32 %v3189_v63, %v4294_v21  ;;  %v551_v7 = vpop.f32.mrb[13].mxu0  ;;  %v796_v8 = vsub.f32 %v4382_v40, %v795_v55 }
 0x118   : > { %v4407_v11 = vsub.f32 %v657_v51, %v4392_v58  ;;  %v4409_v12 = vand.u32 4294901760, %v660_v3  ;;  %v654_v13 = vsel %vm625_vm2, %v617_v62, 0  ;;  %v583_v16 = vmul.f32 %v4294_v21, %v551_v7  ;;  %v3190_v19 = vpop.f32.mrb[14].mxu0  ;;  %3243 = vmatprep.subr.mxu1 %v4281_v17 }
 0x119   : > { %v4415_v20 = vsub.f32 %v651_v59, %v4398_v2  ;;  %v4417_v14 = vand.u32 4294901760, %v654_v13  ;;  %v606_v22 = vadd.f32 %v4299_v23, %v585_v6  ;;  %v586_v24 = vmul.f32 %v3190_v19, %v4294_v21  ;;  %v554_v27 = vpop.f32.mrb[15].mxu0 }
 0x11a   : > { %v4422_v28 = vsub.f32 %v660_v3, %v4409_v12  ;;  %v604_v29 = vadd.f32 %v4299_v23, %v583_v16  ;;  %3197 = vmatmul.mubr.f32.gmra.mrb[2].mxu1 %v777_v54  ;;  %v584_v32 = vmul.f32 %v4294_v21, %v554_v27  ;;  %v787_v33 = vand.u32 4294901760, %v786_v1 }
 0x11b   : > { %v4427_v34 = vsub.f32 %v654_v13, %v4417_v14  ;;  %v622_v36 = vmax.f32 %v606_v22, 0.0  ;;  %v607_v37 = vadd.f32 %v4299_v23, %v586_v24  ;;  %v797_v38 = vand.u32 4294901760, %v796_v8 }
 0x11c   : > { %v620_v41 = vmax.f32 %v604_v29, 0.0  ;;  %v605_v42 = vadd.f32 %v4299_v23, %v584_v32  ;;  %3199 = vmatprep.mubr.f32.mxu1 %v787_v33  ;;  %v805_v44 = vand.u32 4294901760, %v4360_v25  ;;  %v815_v45 = vand.u32 4294901760, %v4374_v35 }
 0x11d   : > { %v669_v46 = vsel %vm625_vm2, %v622_v36, 0  ;;  %v623_v49 = vmax.f32 %v607_v37, 0.0  ;;  %v825_v21 = vand.u32 4294901760, %v4415_v20  ;;  %v835_v51 = vand.u32 4294901760, %v4427_v34 }
 0x11e   : > { %v4436_v53 = vand.u32 4294901760, %v669_v46  ;;  %v663_v54 = vsel %vm625_vm2, %v620_v41, 0  ;;  %v621_v59 = vmax.f32 %v605_v42, 0.0  ;;  %3200 = vmatmul.mubr.f32.gmra.mrb[4].mxu1 %v797_v38  ;;  %v806_v23 = vsub.f32 %v4360_v25, %v805_v44 }
 0x11f   : > { %v4442_v62 = vand.u32 4294901760, %v663_v54  ;;  %v672_v63 = vsel %vm625_vm2, %v623_v49, 0  ;;  %v816_v1 = vsub.f32 %v4374_v35, %v815_v45  ;;  %v826_v3 = vsub.f32 %v4415_v20, %v825_v21 }
 0x120   : > { %v4451_v6 = vand.u32 4294901760, %v672_v63  ;;  %v666_v7 = vsel %vm625_vm2, %v621_v59, 0  ;;  %v807_v8 = vand.u32 4294901760, %v806_v23  ;;  %v4460_v24 = vsub.f32 %v669_v46, %v4436_v53 }
 0x121   : > { %v4455_v13 = vsub.f32 %v663_v54, %v4442_v62  ;;  %v4457_v16 = vand.u32 4294901760, %v666_v7  ;;  %v817_v19 = vand.u32 4294901760, %v816_v1  ;;  %v827_v22 = vand.u32 4294901760, %v826_v3 }
 0x122   : > { %3202 = vmatprep.mubr.f32.mxu1 %v807_v8  ;;  %v836_v27 = vsub.f32 %v4427_v34, %v835_v51  ;;  %v845_v29 = vand.u32 4294901760, %v4407_v11  ;;  %v855_v32 = vand.u32 4294901760, %v4422_v28  ;;  %v4475_v41 = vsub.f32 %v672_v63, %v4451_v6 }
 0x123   : > { %v4468_v33 = vsub.f32 %v666_v7, %v4457_v16  ;;  %3203 = vmatmul.mubr.f32.gmra.mrb[6].mxu1 %v817_v19  ;;  %v865_v36 = vand.u32 4294901760, %v4455_v13  ;;  %v885_v59 = vand.u32 4294901760, %v4460_v24 }
 0x124   : > { %3205 = vmatprep.mubr.f32.mxu1 %v827_v22  ;;  %v837_v37 = vand.u32 4294901760, %v836_v27  ;;  %v846_v38 = vsub.f32 %v4407_v11, %v845_v29  ;;  %v856_v42 = vsub.f32 %v4422_v28, %v855_v32  ;;  %v895_v3 = vand.u32 4294901760, %v4475_v41 }
 0x125   : > { %v866_v46 = vsub.f32 %v4455_v13, %v865_v36  ;;  %v875_v49 = vand.u32 4294901760, %v4468_v33  ;;  %v886_v7 = vsub.f32 %v4460_v24, %v885_v59 }
 0x126   : > { %v847_v54 = vand.u32 4294901760, %v846_v38  ;;  %v857_v1 = vand.u32 4294901760, %v856_v42  ;;  %v896_v19 = vsub.f32 %v4475_v41, %v895_v3 }
 0x127   : > { %3206 = vmatmul.mubr.f32.gmra.mrb[8].mxu1 %v837_v37  ;;  %v876_v23 = vsub.f32 %v4468_v33, %v875_v49  ;;  %v867_v63 = vand.u32 4294901760, %v866_v46  ;;  %v887_v22 = vand.u32 4294901760, %v886_v7 }
 0x128   : > { %3208 = vmatprep.mubr.f32.mxu1 %v847_v54  ;;  %v897_v27 = vand.u32 4294901760, %v896_v19 }
 0x129   : > { %v877_v8 = vand.u32 4294901760, %v876_v23 }
 0x12b   : > { %3209 = vmatmul.mubr.f32.gmra.mrb[10].mxu1 %v857_v1 }
 0x12c   : > { %3211 = vmatprep.mubr.f32.mxu1 %v867_v63 }
 0x12f   : > { %3212 = vmatmul.mubr.f32.gmra.mrb[12].mxu1 %v877_v8 }
 0x130   : > { %3214 = vmatprep.mubr.f32.mxu1 %v887_v22 }
 0x133   : > { %3215 = vmatmul.mubr.f32.gmra.mrb[14].mxu1 %v897_v27 }
 0x134   : > { %3219 = vmatprep.mubr.f32.mxu1 %v4313_v43 }
 0x137   : > { %3220 = vmatmul.mubr.f32.vlgmr.msra.gmra.mrb[0].mxu1 %v4324_v52 }
 0x138   : > { %3244 = vmatpush3.msra.mxu1 %v4281_v17  ;;  %3222 = vmatprep.mubr.f32.mxu1 %v4310_v39 }
 0x139   : > { %3269 = vmatprep.subr.mxu1 %v4257_v5 }
 0x13b   : > { %3223 = vmatmul.mubr.f32.gmra.mrb[2].mxu1 %v4320_v48 }
 0x13c   : > { %3225 = vmatprep.mubr.f32.mxu1 %v4355_v15 }
 0x13f   : > { %3226 = vmatmul.mubr.f32.gmra.mrb[4].mxu1 %v4369_v31 }
 0x140   : > { %3228 = vmatprep.mubr.f32.mxu1 %v4352_v10 }
 0x143   : > { %3229 = vmatmul.mubr.f32.gmra.mrb[6].mxu1 %v4362_v26 }
 0x144   : > { %3231 = vmatprep.mubr.f32.mxu1 %v4398_v2 }
 0x147   : > { %3232 = vmatmul.mubr.f32.gmra.mrb[8].mxu1 %v4417_v14 }
 0x148   : > { %3234 = vmatprep.mubr.f32.mxu1 %v4392_v58 }
 0x14b   : > { %3235 = vmatmul.mubr.f32.gmra.mrb[10].mxu1 %v4409_v12 }
 0x14c   : > { %3237 = vmatprep.mubr.f32.mxu1 %v4442_v62 }
 0x14f   : > { %3238 = vmatmul.mubr.f32.gmra.mrb[12].mxu1 %v4457_v16 }
 0x150   : > { %3240 = vmatprep.mubr.f32.mxu1 %v4436_v53 }
 0x153   : > { %3241 = vmatmul.mubr.f32.gmra.mrb[14].mxu1 %v4451_v6 }
 0x154   : > { %3245 = vmatprep.mubr.f32.mxu1 %v4329_v56 }
 0x157   : > { %3246 = vmatmul.mubr.f32.vlgmr.msra.gmra.mrb[0].mxu1 %v4338_v61 }
 0x158   : > { %3270 = vmatpush3.msra.mxu1 %v4257_v5  ;;  %3248 = vmatprep.mubr.f32.mxu1 %v4318_v47 }
 0x159   : > { %3295 = vmatprep.subr.mxu1 %v4284_v18 }
 0x15b   : > { %3249 = vmatmul.mubr.f32.gmra.mrb[2].mxu1 %v4332_v57  ;;  %v4620_v57 = vld [vmem:[%s5077_s4 + $0x1] ss:$0 sm:$0xff] }
 0x15c   : > { %3251 = vmatprep.mubr.f32.mxu1 %v4367_v30 }
 0x15f   : > { %3252 = vmatmul.mubr.f32.gmra.mrb[4].mxu1 %v4382_v40 }
 0x160   : > { %3254 = vmatprep.mubr.f32.mxu1 %v4360_v25 }
 0x163   : > { %3255 = vmatmul.mubr.f32.gmra.mrb[6].mxu1 %v4374_v35 }
 0x164   : > { %3257 = vmatprep.mubr.f32.mxu1 %v4415_v20 }
 0x167   : > { %3258 = vmatmul.mubr.f32.gmra.mrb[8].mxu1 %v4427_v34 }
 0x168   : > { %3260 = vmatprep.mubr.f32.mxu1 %v4407_v11 }
 0x16b   : > { %3261 = vmatmul.mubr.f32.gmra.mrb[10].mxu1 %v4422_v28 }
 0x16c   : > { %3263 = vmatprep.mubr.f32.mxu1 %v4455_v13 }
 0x16f   : > { %3264 = vmatmul.mubr.f32.gmra.mrb[12].mxu1 %v4468_v33 }
 0x170   : > { %3266 = vmatprep.mubr.f32.mxu1 %v4460_v24 }
 0x173   : > { %3267 = vmatmul.mubr.f32.gmra.mrb[14].mxu1 %v4475_v41 }
 0x174   : > { %3271 = vmatprep.mubr.f32.mxu1 %v745_v0 }
 0x177   : > { %3272 = vmatmul.mubr.f32.vlgmr.msra.gmra.mrb[0].mxu1 %v755_v9 }
 0x178   : > { %3296 = vmatpush3.msra.mxu1 %v4284_v18  ;;  %3274 = vmatprep.mubr.f32.mxu1 %v765_v60 }
 0x179   : > { %3321 = vmatprep.subr.mxu1 %v4257_v5 }
 0x17b   : > { %3275 = vmatmul.mubr.f32.gmra.mrb[2].mxu1 %v775_v4 }
 0x17c   : > { %3277 = vmatprep.mubr.f32.mxu1 %v785_v50 }
 0x17f   : > { %3278 = vmatmul.mubr.f32.gmra.mrb[4].mxu1 %v795_v55 }
 0x180   : > { %3280 = vmatprep.mubr.f32.mxu1 %v805_v44 }
 0x183   : > { %3281 = vmatmul.mubr.f32.gmra.mrb[6].mxu1 %v815_v45 }
 0x184   : > { %3283 = vmatprep.mubr.f32.mxu1 %v825_v21 }
 0x187   : > { %3284 = vmatmul.mubr.f32.gmra.mrb[8].mxu1 %v835_v51 }
 0x188   : > { %3286 = vmatprep.mubr.f32.mxu1 %v845_v29 }
 0x18b   : > { %3287 = vmatmul.mubr.f32.gmra.mrb[10].mxu1 %v855_v32 }
 0x18c   : > { %3289 = vmatprep.mubr.f32.mxu1 %v865_v36 }
 0x18f   : > { %3290 = vmatmul.mubr.f32.gmra.mrb[12].mxu1 %v875_v49 }
 0x190   : > { %3292 = vmatprep.mubr.f32.mxu1 %v885_v59 }
 0x193   : > { %3293 = vmatmul.mubr.f32.gmra.mrb[14].mxu1 %v895_v3 }
 0x194   : > { %3297 = vmatprep.mubr.f32.mxu1 %v4313_v43 }
 0x197   : > { %3298 = vmatmul.mubr.f32.vlgmr.msra.gmra.mrb[0].mxu1 %v4324_v52 }
 0x198   : > { %3322 = vmatpush3.msra.mxu1 %v4257_v5  ;;  %3300 = vmatprep.mubr.f32.mxu1 %v4310_v39  ;;  %v1826_v5 = vld [vmem:[%s5078_s5] sm:$0xff] }
 0x199   : > { %v1856_v17 = vsel %vm1854_vm3, %v1826_v5, 0 }
 0x19a   : > { %v4602_v18 = vand.u32 4294901760, %v1856_v17 }
 0x19b   : > { %3301 = vmatmul.mubr.f32.gmra.mrb[2].mxu1 %v4320_v48 }
 0x19c   : > { %3303 = vmatprep.mubr.f32.mxu1 %v4355_v15 }
 0x19f   : > { %3304 = vmatmul.mubr.f32.gmra.mrb[4].mxu1 %v4369_v31 }
 0x1a0   : > { %3306 = vmatprep.mubr.f32.mxu1 %v4352_v10 }
 0x1a3   : > { %3307 = vmatmul.mubr.f32.gmra.mrb[6].mxu1 %v4362_v26 }
 0x1a4   : > { %3309 = vmatprep.mubr.f32.mxu1 %v4398_v2 }
 0x1a7   : > { %3310 = vmatmul.mubr.f32.gmra.mrb[8].mxu1 %v4417_v14 }
 0x1a8   : > { %3312 = vmatprep.mubr.f32.mxu1 %v4392_v58 }
 0x1ab   : > { %3313 = vmatmul.mubr.f32.gmra.mrb[10].mxu1 %v4409_v12 }
 0x1ac   : > { %3315 = vmatprep.mubr.f32.mxu1 %v4442_v62 }
 0x1af   : > { %3316 = vmatmul.mubr.f32.gmra.mrb[12].mxu1 %v4457_v16 }
 0x1b0   : > { %3318 = vmatprep.mubr.f32.mxu1 %v4436_v53 }
 0x1b3   : > { %3319 = vmatmul.mubr.f32.gmra.mrb[14].mxu1 %v4451_v6 }
 0x1b4   : > { %3323 = vmatprep.mubr.f32.mxu1 %v4313_v43 }
 0x1b7   : > { %3324 = vmatmul.mubr.f32.vlgmr.msra.gmra.mrb[0].mxu1 %v4324_v52  ;;  %v4615_v52 = vld [vmem:[%s5077_s4] ss:$0 sm:$0xff] }
 0x1b8   : > { %3326 = vmatprep.mubr.f32.mxu1 %v4310_v39  ;;  %v4605_v39 = vsub.f32 %v1856_v17, %v4602_v18 }
 0x1ba   : > { %v1998_v43 = vand.u32 4294901760, %v4605_v39  ;;  %3455 = vmatprep.mubr.f32.mxu0 %v4605_v39 }
 0x1bb   : > { %3327 = vmatmul.mubr.f32.gmra.mrb[2].mxu1 %v4320_v48 }
 0x1bc   : > { %3329 = vmatprep.mubr.f32.mxu1 %v4355_v15  ;;  %v1999_v47 = vsub.f32 %v4605_v39, %v1998_v43  ;;  %v1830_v39 = vld [vmem:[%s5079_s6] sm:$0xff] }
 0x1be   : > { %v2000_v48 = vand.u32 4294901760, %v1999_v47 }
 0x1bf   : > { %3330 = vmatmul.mubr.f32.gmra.mrb[4].mxu1 %v4369_v31 }
 0x1c0   : > { %3332 = vmatprep.mubr.f32.mxu1 %v4352_v10 }
 0x1c3   : > { %3333 = vmatmul.mubr.f32.gmra.mrb[6].mxu1 %v4362_v26 }
 0x1c4   : > { %3335 = vmatprep.mubr.f32.mxu1 %v4398_v2 }
 0x1c7   : > { %3336 = vmatmul.mubr.f32.gmra.mrb[8].mxu1 %v4417_v14 }
 0x1c8   : > { %3338 = vmatprep.mubr.f32.mxu1 %v4392_v58 }
 0x1cb   : > { %3339 = vmatmul.mubr.f32.gmra.mrb[10].mxu1 %v4409_v12 }
 0x1cc   : > { %3341 = vmatprep.mubr.f32.mxu1 %v4442_v62 }
 0x1cf   : > { %3342 = vmatmul.mubr.f32.gmra.mrb[12].mxu1 %v4457_v16 }
 0x1d0   : > { %3344 = vmatprep.mubr.f32.mxu1 %v4436_v53 }
 0x1d3   : > { %3345 = vmatmul.mubr.f32.gmra.mrb[14].mxu1 %v4451_v6 }
 0x1d4   : > { %3379 = vmatprep.mubr.f32.mxu1 %v2000_v48 }
 0x28a   : > { %v3325_v56 = vpop.f32.mrb[0].mxu1 }
 0x28b   : > { %v1774_v60 = vmul.f32 %v3325_v56, %v4615_v52  ;;  %v1674_v61 = vpop.f32.mrb[1].mxu1 }
 0x28c   : > { %v1773_v0 = vmul.f32 %v4615_v52, %v1674_v61 }
 0x28d   : > { %v1795_v4 = vadd.f32 %v4620_v57, %v1774_v60 }
 0x28e   : > { %v1794_v9 = vadd.f32 %v4620_v57, %v1773_v0  ;;  %v3328_v10 = vpop.f32.mrb[2].mxu1 }
 0x28f   : > { %v1811_v15 = vmax.f32 %v1795_v4, 0.0  ;;  %v1776_v25 = vmul.f32 %v3328_v10, %v4615_v52  ;;  %v1686_v26 = vpop.f32.mrb[3].mxu1 }
 0x290   : > { %v1810_v30 = vmax.f32 %v1794_v9, 0.0  ;;  %v1775_v31 = vmul.f32 %v4615_v52, %v1686_v26 }
 0x291   : > { %v1871_v35 = vsel %vm1854_vm3, %v1811_v15, 0  ;;  %v1797_v40 = vadd.f32 %v4620_v57, %v1776_v25 }
 0x292   : > { %v1919_v50 = vand.u32 4294901760, %v1871_v35  ;;  %v1868_v55 = vsel %vm1854_vm3, %v1810_v30, 0  ;;  %v1796_v58 = vadd.f32 %v4620_v57, %v1775_v31  ;;  %v3331_v2 = vpop.f32.mrb[4].mxu1 }
 0x293   : > { %v1916_v11 = vand.u32 4294901760, %v1868_v55  ;;  %v1813_v12 = vmax.f32 %v1797_v40, 0.0  ;;  %v1778_v20 = vmul.f32 %v3331_v2, %v4615_v52  ;;  %v1698_v14 = vpop.f32.mrb[5].mxu1 }
 0x294   : > { %v4633_v28 = vsub.f32 %v1871_v35, %v1919_v50  ;;  %v1812_v34 = vmax.f32 %v1796_v58, 0.0  ;;  %v1777_v44 = vmul.f32 %v4615_v52, %v1698_v14 }
 0x295   : > { %v4636_v45 = vpack.c.bf16 %v1919_v50, %v1916_v11  ;;  %v4638_v21 = vsub.f32 %v1868_v55, %v1916_v11  ;;  %v1877_v51 = vsel %vm1854_vm3, %v1813_v12, 0  ;;  %v1799_v53 = vadd.f32 %v4620_v57, %v1778_v20 }
 0x296   : > { %v1925_v62 = vand.u32 4294901760, %v1877_v51  ;;  %v1874_v6 = vsel %vm1854_vm3, %v1812_v34, 0  ;;  %v1798_v13 = vadd.f32 %v4620_v57, %v1777_v44  ;;  %v3334_v16 = vpop.f32.mrb[6].mxu1  ;;  %v2046_v24 = vand.u32 4294901760, %v4633_v28 }
 0x297   : > { %v1922_v29 = vand.u32 4294901760, %v1874_v6  ;;  %v1815_v32 = vmax.f32 %v1799_v53, 0.0  ;;  %v1780_v33 = vmul.f32 %v3334_v16, %v4615_v52  ;;  %v1710_v36 = vpop.f32.mrb[7].mxu1  ;;  %3576 = vmatprep.subr.bf16.mxu1 %v4636_v45  ;;  %v3639_v37 = vpack.c.bf16 %v4633_v28, %v4638_v21 }
 0x298   : > { %v4649_v38 = vsub.f32 %v1877_v51, %v1925_v62  ;;  %v1814_v41 = vmax.f32 %v1798_v13, 0.0  ;;  %v1779_v42 = vmul.f32 %v4615_v52, %v1710_v36  ;;  %3578 = vmatpush3.bf16.xpose.msra.mxu1 %v4636_v45  ;;  %v2039_v46 = vand.u32 4294901760, %v4638_v21 }
 0x299   : > { %v4654_v49 = vpack.c.bf16 %v1925_v62, %v1922_v29  ;;  %v4656_v54 = vsub.f32 %v1874_v6, %v1922_v29  ;;  %v1883_v59 = vsel %vm1854_vm3, %v1815_v32, 0  ;;  %v1801_v23 = vadd.f32 %v4620_v57, %v1780_v33  ;;  %3640 = vmatprep.subr.bf16.mxu0 %v3639_v37 }
 0x29a   : > { %v1931_v63 = vand.u32 4294901760, %v1883_v59  ;;  %v1880_v1 = vsel %vm1854_vm3, %v1814_v41, 0  ;;  %v1800_v3 = vadd.f32 %v4620_v57, %v1779_v42  ;;  %v3337_v7 = vpop.f32.mrb[8].mxu1  ;;  %3642 = vmatpush3.bf16.xpose.msra.mxu0 %v3639_v37  ;;  %v2040_v8 = vsub.f32 %v4638_v21, %v2039_v46 }
 0x29b   : > { %v1928_v19 = vand.u32 4294901760, %v1880_v1  ;;  %v1817_v22 = vmax.f32 %v1801_v23, 0.0  ;;  %v1782_v27 = vmul.f32 %v3337_v7, %v4615_v52  ;;  %v1722_v5 = vpop.f32.mrb[9].mxu1  ;;  %3580 = vmatprep.subr.bf16.mxu1 %v4654_v49  ;;  %v3643_v17 = vpack.c.bf16 %v4649_v38, %v4656_v54 }
 0x29c   : > { %v4669_v47 = vsub.f32 %v1883_v59, %v1931_v63  ;;  %v1816_v48 = vmax.f32 %v1800_v3, 0.0  ;;  %v1781_v56 = vmul.f32 %v4615_v52, %v1722_v5  ;;  %v2041_v60 = vand.u32 4294901760, %v2040_v8 }
 0x29d   : > { %v4672_v61 = vpack.c.bf16 %v1931_v63, %v1928_v19  ;;  %v4674_v0 = vsub.f32 %v1880_v1, %v1928_v19  ;;  %v1889_v4 = vsel %vm1854_vm3, %v1817_v22, 0  ;;  %v1803_v9 = vadd.f32 %v4620_v57, %v1782_v27  ;;  %3644 = vmatprep.subr.bf16.mxu0 %v3643_v17 }
 0x29e   : > { %v1937_v10 = vand.u32 4294901760, %v1889_v4  ;;  %v1886_v15 = vsel %vm1854_vm3, %v1816_v48, 0  ;;  %v1802_v25 = vadd.f32 %v4620_v57, %v1781_v56  ;;  %v3340_v26 = vpop.f32.mrb[10].mxu1  ;;  %v2047_v30 = vsub.f32 %v4633_v28, %v2046_v24 }
 0x29f   : > { %v1934_v31 = vand.u32 4294901760, %v1886_v15  ;;  %v1819_v35 = vmax.f32 %v1803_v9, 0.0  ;;  %v1784_v40 = vmul.f32 %v3340_v26, %v4615_v52  ;;  %v1734_v50 = vpop.f32.mrb[11].mxu1  ;;  %v3647_v55 = vpack.c.bf16 %v4669_v47, %v4674_v0 }
 0x2a0   : > { %v4686_v58 = vsub.f32 %v1889_v4, %v1937_v10  ;;  %v1818_v2 = vmax.f32 %v1802_v25, 0.0  ;;  %v1783_v11 = vmul.f32 %v4615_v52, %v1734_v50  ;;  %3582 = vmatpush3.bf16.xpose.msra.mxu1 %v4654_v49  ;;  %v2048_v12 = vand.u32 4294901760, %v2047_v30 }
 0x2a1   : > { %v4690_v20 = vpack.c.bf16 %v1937_v10, %v1934_v31  ;;  %v4692_v14 = vsub.f32 %v1886_v15, %v1934_v31  ;;  %v1895_v34 = vsel %vm1854_vm3, %v1819_v35, 0  ;;  %v1805_v44 = vadd.f32 %v4620_v57, %v1784_v40  ;;  %3584 = vmatprep.subr.bf16.mxu1 %v4672_v61 }
 0x2a2   : > { %v1943_v51 = vand.u32 4294901760, %v1895_v34  ;;  %v1892_v53 = vsel %vm1854_vm3, %v1818_v2, 0  ;;  %v1804_v62 = vadd.f32 %v4620_v57, %v1783_v11  ;;  %v3343_v6 = vpop.f32.mrb[12].mxu1  ;;  %3646 = vmatpush3.bf16.xpose.msra.mxu0 %v3643_v17  ;;  %v4699_v13 = vpack.c.bf16 %v2048_v12, %v2041_v60 }
 0x2a3   : > { %v1940_v16 = vand.u32 4294901760, %v1892_v53  ;;  %v1821_v29 = vmax.f32 %v1805_v44, 0.0  ;;  %v1786_v32 = vmul.f32 %v3343_v6, %v4615_v52  ;;  %v1746_v33 = vpop.f32.mrb[13].mxu1  ;;  %3648 = vmatprep.subr.bf16.mxu0 %v3647_v55  ;;  %v4704_v36 = vpack.c.bf16 %v4686_v58, %v4692_v14 }
 0x2a4   : > { %v4706_v37 = vsub.f32 %v1895_v34, %v1943_v51  ;;  %v1820_v41 = vmax.f32 %v1804_v62, 0.0  ;;  %v1785_v42 = vmul.f32 %v4615_v52, %v1746_v33  ;;  %v2053_v59 = vand.u32 4294901760, %v4656_v54 }
 0x2a5   : > { %v4710_v23 = vpack.c.bf16 %v1943_v51, %v1940_v16  ;;  %v4712_v63 = vsub.f32 %v1892_v53, %v1940_v16  ;;  %v1901_v1 = vsel %vm1854_vm3, %v1821_v29, 0  ;;  %v1807_v3 = vadd.f32 %v4620_v57, %v1786_v32 }
 0x2a6   : > { %v1949_v7 = vand.u32 4294901760, %v1901_v1  ;;  %v1898_v8 = vsel %vm1854_vm3, %v1820_v41, 0  ;;  %v1806_v19 = vadd.f32 %v4620_v57, %v1785_v42  ;;  %v3346_v22 = vpop.f32.mrb[14].mxu1  ;;  %v2054_v27 = vsub.f32 %v4656_v54, %v2053_v59 }
 0x2a7   : > { %v1946_v5 = vand.u32 4294901760, %v1898_v8  ;;  %v1823_v17 = vmax.f32 %v1807_v3, 0.0  ;;  %v1788_v48 = vmul.f32 %v3346_v22, %v4615_v52  ;;  %v1758_v56 = vpop.f32.mrb[15].mxu1  ;;  %v4724_v60 = vpack.c.bf16 %v4706_v37, %v4712_v63 }
 0x2a8   : > { %v4726_v4 = vsub.f32 %v1901_v1, %v1949_v7  ;;  %v1822_v9 = vmax.f32 %v1806_v19, 0.0  ;;  %v1787_v10 = vmul.f32 %v4615_v52, %v1758_v56  ;;  %3586 = vmatpush3.bf16.xpose.msra.mxu1 %v4672_v61  ;;  %v2055_v15 = vand.u32 4294901760, %v2054_v27 }
 0x2a9   : > { %v4730_v25 = vpack.c.bf16 %v1949_v7, %v1946_v5  ;;  %v4732_v26 = vsub.f32 %v1898_v8, %v1946_v5  ;;  %v1907_v30 = vsel %vm1854_vm3, %v1823_v17, 0  ;;  %v1809_v31 = vadd.f32 %v4620_v57, %v1788_v48  ;;  %3588 = vmatprep.subr.bf16.mxu1 %v4690_v20 }
 0x2aa   : > { %v1955_v35 = vand.u32 4294901760, %v1907_v30  ;;  %v1904_v40 = vsel %vm1854_vm3, %v1822_v9, 0  ;;  %v1808_v50 = vadd.f32 %v4620_v57, %v1787_v10  ;;  %3650 = vmatpush3.bf16.xpose.msra.mxu0 %v3647_v55  ;;  %v2060_v52 = vand.u32 4294901760, %v4649_v38 }
 0x2ab   : > { %v1952_v2 = vand.u32 4294901760, %v1904_v40  ;;  %v1825_v11 = vmax.f32 %v1809_v31, 0.0  ;;  %3652 = vmatprep.subr.bf16.mxu0 %v4704_v36  ;;  %v4743_v12 = vpack.c.bf16 %v4726_v4, %v4732_v26  ;;  %v2067_v34 = vand.u32 4294901760, %v4674_v0 }
 0x2ac   : > { %v4746_v44 = vsub.f32 %v1907_v30, %v1955_v35  ;;  %v1824_v51 = vmax.f32 %v1808_v50, 0.0  ;;  %v2061_v57 = vsub.f32 %v4649_v38, %v2060_v52  ;;  %v2074_v55 = vand.u32 4294901760, %v4669_v47 }
 0x2ad   : > { %v4752_v53 = vpack.c.bf16 %v1955_v35, %v1952_v2  ;;  %v4754_v62 = vsub.f32 %v1904_v40, %v1952_v2  ;;  %v1913_v6 = vsel %vm1854_vm3, %v1825_v11, 0  ;;  %v2068_v16 = vsub.f32 %v4674_v0, %v2067_v34  ;;  %v1827_v0 = vld [vmem:[%s5078_s5 + $0x8] sm:$0xff] }
 0x2ae   : > { %v1961_v29 = vand.u32 4294901760, %v1913_v6  ;;  %v1910_v32 = vsel %vm1854_vm3, %v1824_v51, 0  ;;  %v2062_v33 = vand.u32 4294901760, %v2061_v57  ;;  %v2075_v41 = vsub.f32 %v4669_v47, %v2074_v55 }
 0x2af   : > { %v1958_v42 = vand.u32 4294901760, %v1910_v32  ;;  %v4764_v1 = vpack.c.bf16 %v4746_v44, %v4754_v62  ;;  %v2069_v3 = vand.u32 4294901760, %v2068_v16  ;;  %v2081_v7 = vand.u32 4294901760, %v4692_v14 }
 0x2b0   : > { %v2143_v8 = vsub.f32 %v1913_v6, %v1961_v29  ;;  %3590 = vmatpush3.bf16.xpose.msra.mxu1 %v4690_v20  ;;  %v4768_v19 = vpack.c.bf16 %v2062_v33, %v2055_v15  ;;  %v2076_v22 = vand.u32 4294901760, %v2075_v41  ;;  %v2088_v27 = vand.u32 4294901760, %v4686_v58 }
 0x2b1   : > { %v4771_v5 = vpack.c.bf16 %v1961_v29, %v1958_v42  ;;  %v2136_v17 = vsub.f32 %v1910_v32, %v1958_v42  ;;  %3592 = vmatprep.subr.bf16.mxu1 %v4710_v23  ;;  %v2082_v47 = vsub.f32 %v4692_v14, %v2081_v7  ;;  %v2095_v48 = vand.u32 4294901760, %v4712_v63 }
 0x2b2   : > { %3654 = vmatpush3.bf16.xpose.msra.mxu0 %v4704_v36  ;;  %v4777_v56 = vpack.c.bf16 %v2076_v22, %v2069_v3  ;;  %v2089_v9 = vsub.f32 %v4686_v58, %v2088_v27  ;;  %v2102_v10 = vand.u32 4294901760, %v4706_v37  ;;  %v2109_v15 = vand.u32 4294901760, %v4732_v26 }
 0x2b3   : > { %3656 = vmatprep.subr.bf16.mxu0 %v4724_v60  ;;  %v4783_v30 = vpack.c.bf16 %v2143_v8, %v2136_v17  ;;  %v2083_v31 = vand.u32 4294901760, %v2082_v47  ;;  %v2096_v35 = vsub.f32 %v4712_v63, %v2095_v48  ;;  %v2116_v14 = vand.u32 4294901760, %v4726_v4  ;;  %v1829_v47 = vld [vmem:[%s5078_s5 + $0x18] sm:$0xff] }
 0x2b4   : > { %v2090_v40 = vand.u32 4294901760, %v2089_v9  ;;  %v2103_v36 = vsub.f32 %v4706_v37, %v2102_v10  ;;  %v2110_v50 = vsub.f32 %v4732_v26, %v2109_v15  ;;  %v2123_v58 = vand.u32 4294901760, %v4754_v62 }
 0x2b5   : > { %v2097_v2 = vand.u32 4294901760, %v2096_v35  ;;  %v2117_v11 = vsub.f32 %v4726_v4, %v2116_v14  ;;  %v2130_v51 = vand.u32 4294901760, %v4746_v44  ;;  %v2137_v57 = vand.u32 4294901760, %v2136_v17 }
 0x2b6   : > { %v4792_v6 = vpack.c.bf16 %v2090_v40, %v2083_v31  ;;  %v2104_v16 = vand.u32 4294901760, %v2103_v36  ;;  %v2111_v29 = vand.u32 4294901760, %v2110_v50  ;;  %v2124_v63 = vsub.f32 %v4754_v62, %v2123_v58 }
 0x2b7   : > { %v2118_v32 = vand.u32 4294901760, %v2117_v11  ;;  %v2131_v33 = vsub.f32 %v4746_v44, %v2130_v51  ;;  %v2138_v37 = vsub.f32 %v2136_v17, %v2137_v57  ;;  %v2144_v41 = vand.u32 4294901760, %v2143_v8 }
 0x2b8   : > { %3594 = vmatpush3.bf16.xpose.msra.mxu1 %v4710_v23  ;;  %v4797_v26 = vpack.c.bf16 %v2104_v16, %v2097_v2  ;;  %v2125_v42 = vand.u32 4294901760, %v2124_v63  ;;  %v4803_v4 = vpack.c.bf16 %v2046_v24, %v2039_v46  ;;  %v4813_v17 = vpack.c.bf16 %v2060_v52, %v2053_v59 }
 0x2b9   : > { %3596 = vmatprep.subr.bf16.mxu1 %v4730_v25  ;;  %v4806_v3 = vpack.c.bf16 %v2118_v32, %v2111_v29  ;;  %v2132_v62 = vand.u32 4294901760, %v2131_v33  ;;  %v2139_v22 = vand.u32 4294901760, %v2138_v37  ;;  %v2145_v44 = vsub.f32 %v2143_v8, %v2144_v41 }
 0x2ba   : > { %3658 = vmatpush3.bf16.xpose.msra.mxu0 %v4724_v60  ;;  %v4817_v28 = vpack.c.bf16 %v2074_v55, %v2067_v34  ;;  %v4822_v46 = vpack.c.bf16 %v2088_v27, %v2081_v7  ;;  %v4824_v8 = vpack.c.bf16 %v2102_v10, %v2095_v48  ;;  %v4826_v60 = vpack.c.bf16 %v2116_v14, %v2109_v15  ;;  %v1828_v34 = vld [vmem:[%s5078_s5 + $0x10] sm:$0xff] }
 0x2bb   : > { %3660 = vmatprep.subr.bf16.mxu0 %v4743_v12  ;;  %v4820_v21 = vpack.c.bf16 %v2132_v62, %v2125_v42  ;;  %v2146_v24 = vand.u32 4294901760, %v2145_v44  ;;  %v4828_v54 = vpack.c.bf16 %v2130_v51, %v2123_v58  ;;  %v4830_v38 = vpack.c.bf16 %v2144_v41, %v2137_v57 }
 0x2bc   : > { %v1859_v52 = vsel %vm1854_vm3, %v1827_v0, 0  ;;  %v1862_v7 = vsel %vm1854_vm3, %v1828_v34, 0 }
 0x2bd   : > { %v4835_v59 = vpack.c.bf16 %v2146_v24, %v2139_v22  ;;  %v4845_v55 = vand.u32 4294901760, %v1859_v52  ;;  %v4848_v27 = vand.u32 4294901760, %v1862_v7 }
 0x2bf   : > { %v4854_v48 = vsub.f32 %v1859_v52, %v4845_v55  ;;  %v2017_v9 = vsub.f32 %v1862_v7, %v4848_v27 }
 0x2c0   : > { %3598 = vmatpush3.bf16.xpose.msra.mxu1 %v4730_v25 }
 0x2c1   : > { %3600 = vmatprep.subr.bf16.mxu1 %v4752_v53  ;;  %v2008_v10 = vand.u32 4294901760, %v4854_v48  ;;  %v2018_v31 = vand.u32 4294901760, %v2017_v9 }
 0x2c2   : > { %3662 = vmatpush3.bf16.xpose.msra.mxu0 %v4743_v12  ;;  %v1865_v12 = vsel %vm1854_vm3, %v1829_v47, 0 }
 0x2c3   : > { %3664 = vmatprep.subr.bf16.mxu0 %v4764_v1  ;;  %v4863_v15 = vand.u32 4294901760, %v1865_v12  ;;  %v2009_v35 = vsub.f32 %v4854_v48, %v2008_v10  ;;  %v2019_v40 = vsub.f32 %v2017_v9, %v2018_v31 }
 0x2c5   : > { %v2027_v14 = vsub.f32 %v1865_v12, %v4863_v15  ;;  %v2010_v36 = vand.u32 4294901760, %v2009_v35  ;;  %v2020_v50 = vand.u32 4294901760, %v2019_v40 }
 0x2c8   : > { %3602 = vmatpush3.bf16.xpose.msra.mxu1 %v4752_v53 }
 0x2c9   : > { %3604 = vmatprep.subr.bf16.mxu1 %v4771_v5 }
 0x2ca   : > { %3666 = vmatpush3.bf16.xpose.msra.mxu0 %v4764_v1  ;;  %v2028_v1 = vand.u32 4294901760, %v2027_v14 }
 0x2cb   : > { %3668 = vmatprep.subr.bf16.mxu0 %v4783_v30 }
 0x2cc   : > { %v2029_v58 = vsub.f32 %v2027_v14, %v2028_v1 }
 0x2ce   : > { %v2030_v2 = vand.u32 4294901760, %v2029_v58 }
 0x2d0   : > { %3606 = vmatpush3.bf16.xpose.msra.mxu1 %v4771_v5 }
 0x2d1   : > { %3608 = vmatprep.subr.bf16.mxu1 %v4699_v13 }
 0x2d2   : > { %3670 = vmatpush3.bf16.xpose.msra.mxu0 %v4783_v30 }
 0x2d3   : > { %3672 = vmatprep.subr.bf16.mxu0 %v4636_v45 }
 0x2d7   : > { %3380 = vmatmul.mubr.f32.vlgmr.msra.gmra.mrb[16].mxu1 %v2010_v36 }
 0x2d8   : > { %3610 = vmatpush3.bf16.xpose.msra.mxu1 %v4699_v13  ;;  %3382 = vmatprep.mubr.f32.mxu1 %v2020_v50  ;;  %v4119_v13 = vmov 0  }
 0x2d9   : > { %3612 = vmatprep.subr.bf16.mxu1 %v4768_v19  ;;  %3456 = vmatmul.mubr.f32.vlgmr.msra.gmra.mrb[16].mxu0 %v4854_v48 }
 0x2da   : > { %3674 = vmatpush3.bf16.xpose.msra.mxu0 %v4636_v45  ;;  %3458 = vmatprep.mubr.f32.mxu0 %v2017_v9 }
 0x2db   : > { %3676 = vmatprep.subr.bf16.mxu0 %v4654_v49  ;;  %3383 = vmatmul.mubr.f32.gmra.mrb[18].mxu1 %v2030_v2 }
 0x2dc   : > { %3417 = vmatprep.mubr.f32.mxu1 %v4602_v18  ;;  %3952 = vset.pattern.permute.xlu0 %v4119_v13 }
 0x2dd   : > { %3459 = vmatmul.mubr.f32.gmra.mrb[18].mxu0 %v2027_v14  ;;  %1836 = vperm.xlu0 %3952, %v1830_v39  }
 0x2de   : > { %3493 = vmatprep.mubr.f32.mxu0 %v1998_v43  ;;  %v1832_v43 = vld [vmem:[%s5079_s6 + $0x10] sm:$0xff]  ;;  %3953 = vset.pattern.permute.xlu1 %v4119_v13 }
 0x2df   : > { %1846 = vperm.xlu1 %3953, %v1832_v43  }
 0x2e0   : > { %3614 = vmatpush3.bf16.xpose.msra.mxu1 %v4768_v19  ;;  %v1831_v19 = vld [vmem:[%s5079_s6 + $0x8] sm:$0xff] }
 0x2e1   : > { %3616 = vmatprep.subr.bf16.mxu1 %v4777_v56  ;;  %1841 = vperm.xlu0 %3952, %v1831_v19  }
 0x2e2   : > { %3678 = vmatpush3.bf16.xpose.msra.mxu0 %v4654_v49 }
 0x2e3   : > { %3680 = vmatprep.subr.bf16.mxu0 %v4672_v61 }
 0x2e8   : > { %3618 = vmatpush3.bf16.xpose.msra.mxu1 %v4777_v56  ;;  %v1833_v56 = vld [vmem:[%s5079_s6 + $0x18] sm:$0xff] }
 0x2e9   : > { %3620 = vmatprep.subr.bf16.mxu1 %v4792_v6  ;;  %1851 = vperm.xlu1 %3953, %v1833_v56  }
 0x2ea   : > { %3682 = vmatpush3.bf16.xpose.msra.mxu0 %v4672_v61 }
 0x2eb   : > { %3684 = vmatprep.subr.bf16.mxu0 %v4690_v20 }
 0x2f0   : > { %3622 = vmatpush3.bf16.xpose.msra.mxu1 %v4792_v6 }
 0x2f1   : > { %3624 = vmatprep.subr.bf16.mxu1 %v4797_v26 }
 0x2f2   : > { %3686 = vmatpush3.bf16.xpose.msra.mxu0 %v4690_v20 }
 0x2f3   : > { %3688 = vmatprep.subr.bf16.mxu0 %v4710_v23 }
 0x2f8   : > { %3626 = vmatpush3.bf16.xpose.msra.mxu1 %v4797_v26 }
 0x2f9   : > { %3628 = vmatprep.subr.bf16.mxu1 %v4806_v3 }
 0x2fa   : > { %3690 = vmatpush3.bf16.xpose.msra.mxu0 %v4710_v23 }
 0x2fb   : > { %3692 = vmatprep.subr.bf16.mxu0 %v4730_v25 }
 0x300   : > { %3630 = vmatpush3.bf16.xpose.msra.mxu1 %v4806_v3 }
 0x301   : > { %3632 = vmatprep.subr.bf16.mxu1 %v4820_v21 }
 0x302   : > { %3694 = vmatpush3.bf16.xpose.msra.mxu0 %v4730_v25 }
 0x303   : > { %3696 = vmatprep.subr.bf16.mxu0 %v4752_v53 }
 0x308   : > { %3634 = vmatpush3.bf16.xpose.msra.mxu1 %v4820_v21 }
 0x309   : > { %3636 = vmatprep.subr.bf16.mxu1 %v4835_v59 }
 0x30a   : > { %3698 = vmatpush3.bf16.xpose.msra.mxu0 %v4752_v53 }
 0x30b   : > { %3700 = vmatprep.subr.bf16.mxu0 %v4771_v5 }
 0x310   : > { %3638 = vmatpush3.bf16.xpose.msra.mxu1 %v4835_v59 }
 0x312   : > { %3702 = vmatpush3.bf16.xpose.msra.mxu0 %v4771_v5 }
 0x313   : > { %3704 = vmatprep.subr.bf16.mxu0 %v4803_v4 }
 0x317   : > { %3418 = vmatmul.mubr.f32.vlgmr.msra.gmra.mrb[16].mxu1 %v4845_v55 }
 0x318   : > { %3420 = vmatprep.mubr.f32.mxu1 %v4848_v27 }
 0x319   : > { %3494 = vmatmul.mubr.f32.vlgmr.msra.gmra.mrb[16].mxu0 %v2008_v10 }
 0x31a   : > { %3706 = vmatpush3.bf16.xpose.msra.mxu0 %v4803_v4  ;;  %3496 = vmatprep.mubr.f32.mxu0 %v2018_v31 }
 0x31b   : > { %3708 = vmatprep.subr.bf16.mxu0 %v4813_v17  ;;  %3421 = vmatmul.mubr.f32.gmra.mrb[18].mxu1 %v4863_v15 }
 0x31d   : > { %3497 = vmatmul.mubr.f32.gmra.mrb[18].mxu0 %v2028_v1 }
 0x31e   : > { %3531 = vmatprep.mubr.f32.mxu0 %v4602_v18 }
 0x322   : > { %3710 = vmatpush3.bf16.xpose.msra.mxu0 %v4813_v17 }
 0x323   : > { %3712 = vmatprep.subr.bf16.mxu0 %v4817_v28 }
 0x32a   : > { %3714 = vmatpush3.bf16.xpose.msra.mxu0 %v4817_v28 }
 0x32b   : > { %3716 = vmatprep.subr.bf16.mxu0 %v4822_v46 }
 0x332   : > { %3718 = vmatpush3.bf16.xpose.msra.mxu0 %v4822_v46 }
 0x333   : > { %3720 = vmatprep.subr.bf16.mxu0 %v4824_v8 }
 0x33a   : > { %3722 = vmatpush3.bf16.xpose.msra.mxu0 %v4824_v8 }
 0x33b   : > { %3724 = vmatprep.subr.bf16.mxu0 %v4826_v60 }
 0x342   : > { %3726 = vmatpush3.bf16.xpose.msra.mxu0 %v4826_v60 }
 0x343   : > { %3728 = vmatprep.subr.bf16.mxu0 %v4828_v54 }
 0x34a   : > { %3730 = vmatpush3.bf16.xpose.msra.mxu0 %v4828_v54 }
 0x34b   : > { %3732 = vmatprep.subr.bf16.mxu0 %v4830_v38 }
 0x352   : > { %3734 = vmatpush3.bf16.xpose.msra.mxu0 %v4830_v38 }
 0x353   : > { %3736 = vmatprep.subr.bf16.mxu0 %v4636_v45 }
 0x359   : > { %3532 = vmatmul.mubr.f32.vlgmr.msra.gmra.mrb[16].mxu0 %v4845_v55 }
 0x35a   : > { %3738 = vmatpush3.bf16.xpose.msra.mxu0 %v4636_v45  ;;  %3534 = vmatprep.mubr.f32.mxu0 %v4848_v27 }
 0x35b   : > { %3740 = vmatprep.subr.bf16.mxu0 %v4654_v49 }
 0x35d   : > { %3535 = vmatmul.mubr.f32.gmra.mrb[18].mxu0 %v4863_v15 }
 0x35e   : > { %3569 = vmatprep.mubr.f32.mxu0 %v4602_v18 }
 0x362   : > { %3742 = vmatpush3.bf16.xpose.msra.mxu0 %v4654_v49 }
 0x363   : > { %3744 = vmatprep.subr.bf16.mxu0 %v4672_v61 }
 0x36a   : > { %3746 = vmatpush3.bf16.xpose.msra.mxu0 %v4672_v61 }
 0x36b   : > { %3748 = vmatprep.subr.bf16.mxu0 %v4690_v20 }
 0x372   : > { %3750 = vmatpush3.bf16.xpose.msra.mxu0 %v4690_v20  ;;  %v1837_v20 = vpop.permute.xlu0 %1836 }
 0x373   : > { %3752 = vmatprep.subr.bf16.mxu0 %v4710_v23 }
 0x37a   : > { %3754 = vmatpush3.bf16.xpose.msra.mxu0 %v4710_v23  ;;  %v1847_v23 = vpop.permute.xlu1 %1846 }
 0x37b   : > { %3756 = vmatprep.subr.bf16.mxu0 %v4730_v25 }
 0x382   : > { %3758 = vmatpush3.bf16.xpose.msra.mxu0 %v4730_v25  ;;  %v1842_v25 = vpop.permute.xlu0 %1841 }
 0x383   : > { %3760 = vmatprep.subr.bf16.mxu0 %v4752_v53 }
 0x38a   : > { %3762 = vmatpush3.bf16.xpose.msra.mxu0 %v4752_v53  ;;  %v1852_v53 = vpop.permute.xlu1 %1851 }
 0x38b   : > { %3764 = vmatprep.subr.bf16.mxu0 %v4771_v5 }
 0x392   : > { %3766 = vmatpush3.bf16.xpose.msra.mxu0 %v4771_v5 }
 0x399   : > { %3570 = vmatmul.mubr.f32.vlgmr.msra.gmra.mrb[16].mxu0 %v4845_v55 }
 0x39a   : > { %3572 = vmatprep.mubr.f32.mxu0 %v4848_v27 }
 0x39d   : > { %3573 = vmatmul.mubr.f32.gmra.mrb[18].mxu0 %v4863_v15 }
 0x3ea   : > { %v3419_v18 = vpop.f32.mrb[16].mxu1 }
 0x3eb   : > { %v2183_v45 = vpop.f32.mrb[17].mxu1  ;;  %v3767_v30 = vadd.f32 %v3419_v18, %v1842_v25 }
 0x3ec   : > { %v3769_v11 = vadd.f32 %v2183_v45, %v1837_v20 }
 0x3ee   : > { %v3422_v49 = vpop.f32.mrb[18].mxu1 }
 0x3ef   : > { %v2195_v61 = vpop.f32.mrb[19].mxu1  ;;  %v3771_v16 = vadd.f32 %v3422_v49, %v1852_v53 }
 0x3f0   : > { %v3773_v63 = vadd.f32 %v2195_v61, %v1847_v23 }
 0x46c   : > { %v3571_v51 = vpop.f32.mrb[16].mxu0 }
 0x46d   : > { %v3768_v57 = vadd.f32 %v3767_v30, %v3571_v51  ;;  %v2663_v6 = vpop.f32.mrb[17].mxu0 }
 0x46e   : > { %v3770_v5 = vadd.f32 %v3769_v11, %v2663_v6 }
 0x46f   : > { %v2917_v29 = vmul.f32 -1.442695, %v3768_v57 }
 0x470   : > { %v2916_v32 = vmul.f32 -1.442695, %v3770_v5  ;;  %v3574_v33 = vpop.f32.mrb[18].mxu0 }
 0x471   : > { %3967 = vpow2.f32 %v2917_v29  ;;  %v3772_v37 = vadd.f32 %v3771_v16, %v3574_v33  ;;  %v2675_v41 = vpop.f32.mrb[19].mxu0 }
 0x472   : > { %3969 = vpow2.f32 %v2916_v32  ;;  %v3774_v26 = vadd.f32 %v3773_v63, %v2675_v41 }
 0x473   : > { %v2919_v42 = vmul.f32 -1.442695, %v3772_v37 }
 0x474   : > { %v2918_v4 = vmul.f32 -1.442695, %v3774_v26 }
 0x475   : > { %3971 = vpow2.f32 %v2919_v42 }
 0x476   : > { %3973 = vpow2.f32 %v2918_v4 }
 0x47b   : > { %v3968_v3 = vpop.eup %3967 }
 0x47c   : > { %v3970_v62 = vpop.eup %3969  ;;  %v2698_v22 = vadd.f32 1.0, %v3968_v3 }
 0x47d   : > { %v2697_v44 = vadd.f32 1.0, %v3970_v62 }
 0x47e   : > { %3975 = vrcp.f32 %v2698_v22 }
 0x47f   : > { %v3972_v17 = vpop.eup %3971  ;;  %3977 = vrcp.f32 %v2697_v44 }
 0x480   : > { %v3974_v28 = vpop.eup %3973  ;;  %v2700_v21 = vadd.f32 1.0, %v3972_v17 }
 0x481   : > { %v2699_v24 = vadd.f32 1.0, %v3974_v28 }
 0x482   : > { %3979 = vrcp.f32 %v2700_v21 }
 0x483   : > { %3981 = vrcp.f32 %v2699_v24 }
 0x488   : > { %v3976_v46 = vpop.eup %3975 }
 0x489   : > { %v3978_v8 = vpop.eup %3977  ;;  %2710 = vst [vmem:[%s329_s20 + $0x8] sm:$0xff] %v3976_v46 }
 0x48a   : > { %2709 = vst [vmem:[%s329_s20] sm:$0xff] %v3978_v8 }
 0x48b   : > { %4004 = shalt.err (!%p4001_p7)
}
 0x48c   : > { %s4005_s20 = scalar_lea.hbm %s4976_s24, 256  ;;  %s4009_s14 = scalar_lea.hbm %s5080_s7, 1024 }
 0x48d   : > { %p4006_p9 = scmp.ne.s32.totalorder %s4976_s24, %s4005_s20  ;;  %p4010_p12 = scmp.lt.u32.totalorder %s4976_s24, %s5080_s7 }
 0x48e   : > { %p4011_p13 = scmp.lt.u32.totalorder %s4009_s14, %s4005_s20  ;;  %p4013_p1 = scmp.lt.u32.totalorder %s4005_s20, %s4976_s24 }
 0x48f   : > { %p4007_p10 = pnand %p4006_p9, %p4221_p3 }
 0x490   : > { %p4012_p0 = por %p4011_p13, %p4010_p12 }
 0x491   : > { %p4008_p11 = pneg %p4007_p10 }
 0x492   : > { %p4014_p2 = por %p4013_p1, %p4012_p0 }
 0x494   : > { %p4015_p4 = pnand %p4014_p2, %p4008_p11 }
 0x496   : > { %4018 = shalt.err (!%p4015_p4)
}
 0x497   : > { %s5085_s16 = smov 128   ;;  %s4122_s9 = smov 256   ;;  %v3980_v60 = vpop.eup %3979 }
 0x498   : > { %s4123_s30 = smov 8   ;;  %s5091_s17 = scalar_lea.sflag [#allocation3], %s4961_s3  ;;  %v3982_v54 = vpop.eup %3981  ;;  %v2712_v38 = vsub.f32 %v3976_v46, %v3980_v60 }
 0x499   : > { %3872 = dma.vmem_to_hbm [thread:$0]  (%p4221_p3), %s4978_s21, 256, %s4976_s24, %s5091_s17, %s5085_s16, %s4122_s9, %s4123_s30   ;;  %v2711_v0 = vsub.f32 %v3978_v8, %v3982_v54 }
 0x49a   : > { %v2921_v59 = vmul.f32 -50.0, %v2712_v38  ;;  %s5092_s26 = sshll.u32 %s4961_s3, 4  ;;  %s5093_s20 = sshll.u32 %s4966_s13, 7 }
 0x49b   : > { %v2920_v52 = vmul.f32 -50.0, %v2711_v0  ;;  %s336_s21 = scalar_lea.vmem [#allocation4], %s5092_s26  ;;  %s5014_s25 = scalar_lea.hbm %s5081_s8, %s5093_s20 }
 0x49c   : > { %v2719_v34 = vmul.f32 1.442695, %v2921_v59  ;;  %s2766_s24 = sshll.u32 %s336_s21, 4  ;;  %s4124_s13 = smov [#allocation4]   ;;  %s5016_s24 = int_to_ptr.vmem [resolvable:$true] %s2766_s24 }
 0x49d   : > { %v2717_v55 = vmul.f32 1.442695, %v2920_v52  ;;  %s4019_s16 = scalar_lea.vmem %s5016_s24, 256  ;;  %s4023_s26 = sshll.u32 %s4124_s13, 4  ;;  %s4024_s26 = int_to_ptr.vmem [resolvable:$false] %s4023_s26 }
 0x49e   : > { %3983 = vpow2.f32 %v2719_v34  ;;  %p4020_p5 = scmp.ne.s32.totalorder %s5016_s24, %s4019_s16  ;;  %s4025_s22 = scalar_lea.vmem %s4024_s26, 512 }
 0x49f   : > { %3985 = vpow2.f32 %v2717_v55  ;;  %p4026_p9 = scmp.lt.s32.totalorder %s5016_s24, %s4024_s26  ;;  %p4027_p10 = scmp.lt.s32.totalorder %s4025_s22, %s4019_s16 }
 0x4a0   : > { %p4021_p6 = pnand %p4020_p5, %p4221_p3 }
 0x4a1   : > { %p4028_p11 = por %p4027_p10, %p4026_p9 }
 0x4a2   : > { %p4022_p7 = pneg %p4021_p6 }
 0x4a4   : > { %p4029_p12 = pnand %p4028_p11, %p4022_p7 }
 0x4a8   : > { %v3984_v7 = vpop.eup %3983 }
 0x4a9   : > { %v3986_v27 = vpop.eup %3985  ;;  %v2722_v47 = vadd.f32 1.0, %v3984_v7 }
 0x4aa   : > { %v2721_v48 = vadd.f32 1.0, %v3986_v27 }
 0x4ab   : > { %3987 = vrcp.f32 %v2722_v47 }
 0x4ac   : > { %3989 = vrcp.f32 %v2721_v48 }
 0x4b5   : > { %v3988_v12 = vpop.eup %3987 }
 0x4b6   : > { %v3990_v9 = vpop.eup %3989  ;;  %2728 = vst [vmem:[%s336_s21 + $0x8] sm:$0xff] %v3988_v12 }
 0x4b7   : > { %2727 = vst [vmem:[%s336_s21] sm:$0xff] %v3990_v9 }
 0x4b8   : > { %4032 = shalt.err (!%p4029_p12)
}
 0x4b9   : > { %s4033_s21 = scalar_lea.hbm %s5014_s25, 256  ;;  %s4037_s13 = scalar_lea.hbm %s5081_s8, 1024 }
 0x4ba   : > { %p4034_p13 = scmp.ne.s32.totalorder %s5014_s25, %s4033_s21  ;;  %p4038_p2 = scmp.lt.u32.totalorder %s5014_s25, %s5081_s8 }
 0x4bb   : > { %p4039_p4 = scmp.lt.u32.totalorder %s4037_s13, %s4033_s21  ;;  %p4041_p6 = scmp.lt.u32.totalorder %s4033_s21, %s5014_s25 }
 0x4bc   : > { %p4035_p0 = pnand %p4034_p13, %p4221_p3 }
 0x4bd   : > { %p4040_p5 = por %p4039_p4, %p4038_p2 }
 0x4be   : > { %p4036_p1 = pneg %p4035_p0 }
 0x4bf   : > { %p4042_p7 = por %p4041_p6, %p4040_p5 }
 0x4c1   : > { %p4043_p9 = pnand %p4042_p7, %p4036_p1 }
 0x4c3   : > { %4046 = shalt.err (!%p4043_p9)
}
 0x4c4   : > { %s5094_s16 = smov 128   ;;  %s5095_s22 = scalar_lea.sflag [#allocation5], %s4961_s3 }
 0x4c5   : > { %3873 = dma.vmem_to_hbm [thread:$0]  (%p4221_p3), %s5016_s24, 256, %s5014_s25, %s5095_s22, %s5094_s16, %s4122_s9, %s4123_s30  }
 0x4c6 PF: > { %p3883_p10 = scmp.ge.s32.totalorder %s4117_s12, 2  ;;  %s2781_s17 = sand.u32 1, %s4089_s27  }
 0x4c7   : > { %s2782_s21 = scalar_lea.sflag [#allocation3], %s2781_s17 }
 0x4c8   : > { %p3877_p11 = pnand %p3883_p10, %p4230_p8 }
 0x4ca   : > { %4080 = dma.done.wait (!%p3877_p11), %s2782_s21, 256  }
 0x4cb   : > { %4082 = vsyncadd (!%p3877_p11), %s2782_s21, 4294967040  ;;  %s2791_s18 = scalar_lea.sflag [#allocation5], %s2781_s17 }
 0x4cc   : > { %4084 = dma.done.wait (!%p3877_p11), %s2791_s18, 256  }
 0x4cd   : > { %4086 = vsyncadd (!%p3877_p11), %s2791_s18, 4294967040  ;;  %s25_s12 = sadd.s32 1, %s4117_s12   ;;  %s5096_s3 = sld [smem:[#allocation8_spill]] }
 0x4ce   : > { %p22_p12 = scmp.ge.s32.totalorder %s25_s12, 6   ;;  %s5097_s27 = smov %s4093_s28 }
 0x4cf   : > { %s5098_s28 = smov %s4097_s29  ;;  %s5099_s29 = smov %s4239_s23 }
 0x4d0   : > { %s5100_s30 = smov %s4109_s10  ;;  %s5101_s9 = smov %s4113_s11 }
 0x4d1   : > { %s5102_s10 = smov %s5105_s15  ;;  %24 = sbr.rel (!%p22_p12) target bundleno = 9 (0x9), region = 100 }
 0x4d3   : > { %s5103_s11 = smov %s5096_s3 }
 0x4d8   :  { %2796 = vsyncpa [#allocation3], 1 }
 0x4d9   :  { %2798 = vsyncpa [#allocation3 + $0x1], 1 }
 0x4da   :  { %2799 = vsyncpa [#allocation5], 1 }
 0x4db   :  { %2801 = vsyncpa [#allocation5 + $0x1], 1 }

</bundles_post_ra>
